<compile_context>
chip_gen: v7x
topology: tpu7x:2x2x1
jax: 0.10.0
libtpu: 0.0.40
codegen_flags: <defaults>
</compile_context>

<pallas_src>
import functools
import math

import jax
import jax.numpy as jnp
from jax.experimental import pallas as pl
from jax.experimental.pallas import tpu as pltpu

_COMPUTE_DTYPE = jnp.bfloat16
_VMEM_LIMIT = 48 * 1024 * 1024          # < v7x's 64 MiB/TC; ample on v5e/v6e (128 MiB)
_GELU_C = math.sqrt(2.0 / math.pi)
_FULL_K_THRESHOLD = 1536                # K <= this -> single-pass contraction (no K grid)


def _pick_tile(dim, target, granules):
    """Largest tile <= target that divides dim, preferring coarser granules.

    256-multiples keep the 2x256x256 MXU on v6e/v7x fully fed (a 384-wide tile would
    half-fill the second pass); 128 is the lane granule; 8 the sublane granule.
    """
    if dim <= target:
        return dim
    for g in granules:
        t = (target // g) * g
        while t >= g:
            if dim % t == 0:
                return t
            t -= g
    # TODO(synk): pad the operand instead of falling back to the full dimension.
    return dim


def _gelu(y):
    # TODO(synk): switch to exact erf-based GELU once erf lowering in Mosaic is
    # confirmed; tanh approximation used in the fused epilogue.
    return 0.5 * y * (1.0 + jnp.tanh(_GELU_C * (y + 0.044715 * y * y * y)))


# --------------------------- tiled matmul kernels ---------------------------

def _matmul_bias_fullk_kernel(x_ref, w_ref, b_ref, o_ref, *, activation):
    """Single-pass contraction: no K grid axis, no f32 accumulator round-trip."""
    y = jnp.dot(x_ref[...], w_ref[...], preferred_element_type=jnp.float32)
    y = y + b_ref[...]
    if activation == "gelu":
        y = _gelu(y)
    o_ref[...] = y.astype(o_ref.dtype)


def _matmul_bias_kernel(x_ref, w_ref, b_ref, o_ref, acc_ref, *, activation):
    k = pl.program_id(2)

    @pl.when(k == 0)
    def _():
        acc_ref[...] = jnp.zeros_like(acc_ref)

    acc_ref[...] += jnp.dot(x_ref[...], w_ref[...],
                            preferred_element_type=jnp.float32)

    @pl.when(k == pl.num_programs(2) - 1)
    def _():
        y = acc_ref[...] + b_ref[...]
        if activation == "gelu":
            y = _gelu(y)
        o_ref[...] = y.astype(o_ref.dtype)


def linear_bias_act(x, w, b, activation="none", tm=512, tn=768, tk=768):
    """y = act(x @ W + b).  Full-K single pass when K is hidden-sized; tiled
    (M,N,K) grid with an f32 VMEM accumulator only for large K."""
    M, K = x.shape
    N = w.shape[1]
    tm = _pick_tile(M, tm, (256, 8))
    tn = _pick_tile(N, tn, (256, 128))
    b2 = b.reshape(1, N).astype(jnp.float32)

    if K <= _FULL_K_THRESHOLD:
        grid = (M // tm, N // tn)
        return pl.pallas_call(
            functools.partial(_matmul_bias_fullk_kernel, activation=activation),
            out_shape=jax.ShapeDtypeStruct((M, N), x.dtype),
            grid_spec=pltpu.PrefetchScalarGridSpec(
                num_scalar_prefetch=0,
                grid=grid,
                in_specs=[
                    pl.BlockSpec((tm, K), lambda i, j: (i, 0)),
                    pl.BlockSpec((K, tn), lambda i, j: (0, j)),
                    pl.BlockSpec((1, tn), lambda i, j: (0, j)),
                ],
                out_specs=pl.BlockSpec((tm, tn), lambda i, j: (i, j)),
            ),
            compiler_params=pltpu.CompilerParams(
                dimension_semantics=("parallel", "parallel"),
                vmem_limit_bytes=_VMEM_LIMIT),
        )(x, w, b2)

    tk = _pick_tile(K, tk, (256, 128))
    grid = (M // tm, N // tn, K // tk)
    return pl.pallas_call(
        functools.partial(_matmul_bias_kernel, activation=activation),
        out_shape=jax.ShapeDtypeStruct((M, N), x.dtype),
        grid_spec=pltpu.PrefetchScalarGridSpec(
            num_scalar_prefetch=0,
            grid=grid,
            in_specs=[
                pl.BlockSpec((tm, tk), lambda i, j, k: (i, k)),
                pl.BlockSpec((tk, tn), lambda i, j, k: (k, j)),
                pl.BlockSpec((1, tn), lambda i, j, k: (0, j)),
            ],
            out_specs=pl.BlockSpec((tm, tn), lambda i, j, k: (i, j)),
            scratch_shapes=[pltpu.VMEM((tm, tn), jnp.float32)],
        ),
        compiler_params=pltpu.CompilerParams(
            dimension_semantics=("parallel", "parallel", "arbitrary"),
            vmem_limit_bytes=_VMEM_LIMIT),
    )(x, w, b2)


def _res_ln_epilogue(y, r, g, be, eps, out_dtype):
    y = y + r
    mean = jnp.mean(y, axis=-1, keepdims=True)
    c = y - mean
    var = jnp.mean(c * c, axis=-1, keepdims=True)
    return (c * jax.lax.rsqrt(var + eps) * g + be).astype(out_dtype)


def _matmul_res_ln_fullk_kernel(x_ref, w_ref, b_ref, r_ref, g_ref, be_ref,
                                o_ref, *, eps):
    y = jnp.dot(x_ref[...], w_ref[...], preferred_element_type=jnp.float32)
    y = y + b_ref[...]
    o_ref[...] = _res_ln_epilogue(y, r_ref[...].astype(jnp.float32),
                                  g_ref[...], be_ref[...], eps, o_ref.dtype)


def _matmul_res_ln_kernel(x_ref, w_ref, b_ref, r_ref, g_ref, be_ref,
                          o_ref, acc_ref, *, eps):
    k = pl.program_id(1)

    @pl.when(k == 0)
    def _():
        acc_ref[...] = jnp.zeros_like(acc_ref)

    acc_ref[...] += jnp.dot(x_ref[...], w_ref[...],
                            preferred_element_type=jnp.float32)

    @pl.when(k == pl.num_programs(1) - 1)
    def _():
        y = acc_ref[...] + b_ref[...]
        o_ref[...] = _res_ln_epilogue(y, r_ref[...].astype(jnp.float32),
                                      g_ref[...], be_ref[...], eps, o_ref.dtype)


def linear_residual_layernorm(x, w, b, res, gamma, beta, eps, tm=512, tk=768):
    """LayerNorm((x @ W + b) + res).  N (=hidden) stays untiled so the LN epilogue
    sees full rows; M is tiled, and K only when it is intermediate-sized."""
    M, K = x.shape
    N = w.shape[1]
    tm = _pick_tile(M, tm, (256, 8))
    b2 = b.reshape(1, N).astype(jnp.float32)
    g2 = gamma.reshape(1, N).astype(jnp.float32)
    be2 = beta.reshape(1, N).astype(jnp.float32)

    if K <= _FULL_K_THRESHOLD:
        grid = (M // tm,)
        return pl.pallas_call(
            functools.partial(_matmul_res_ln_fullk_kernel, eps=eps),
            out_shape=jax.ShapeDtypeStruct((M, N), x.dtype),
            grid_spec=pltpu.PrefetchScalarGridSpec(
                num_scalar_prefetch=0,
                grid=grid,
                in_specs=[
                    pl.BlockSpec((tm, K), lambda i: (i, 0)),
                    pl.BlockSpec((K, N), lambda i: (0, 0)),
                    pl.BlockSpec((1, N), lambda i: (0, 0)),
                    pl.BlockSpec((tm, N), lambda i: (i, 0)),
                    pl.BlockSpec((1, N), lambda i: (0, 0)),
                    pl.BlockSpec((1, N), lambda i: (0, 0)),
                ],
                out_specs=pl.BlockSpec((tm, N), lambda i: (i, 0)),
            ),
            compiler_params=pltpu.CompilerParams(
                dimension_semantics=("parallel",),
                vmem_limit_bytes=_VMEM_LIMIT),
        )(x, w, b2, res, g2, be2)

    tk = _pick_tile(K, tk, (256, 128))
    grid = (M // tm, K // tk)
    return pl.pallas_call(
        functools.partial(_matmul_res_ln_kernel, eps=eps),
        out_shape=jax.ShapeDtypeStruct((M, N), x.dtype),
        grid_spec=pltpu.PrefetchScalarGridSpec(
            num_scalar_prefetch=0,
            grid=grid,
            in_specs=[
                pl.BlockSpec((tm, tk), lambda i, k: (i, k)),
                pl.BlockSpec((tk, N), lambda i, k: (k, 0)),
                pl.BlockSpec((1, N), lambda i, k: (0, 0)),
                pl.BlockSpec((tm, N), lambda i, k: (i, 0)),
                pl.BlockSpec((1, N), lambda i, k: (0, 0)),
                pl.BlockSpec((1, N), lambda i, k: (0, 0)),
            ],
            out_specs=pl.BlockSpec((tm, N), lambda i, k: (i, 0)),
            scratch_shapes=[pltpu.VMEM((tm, N), jnp.float32)],
        ),
        compiler_params=pltpu.CompilerParams(
            dimension_semantics=("parallel", "arbitrary"),
            vmem_limit_bytes=_VMEM_LIMIT),
    )(x, w, b2, res, g2, be2)


# -------------------------- flash-style attention ---------------------------

def _flash_attn_kernel(q_ref, k_ref, v_ref, mask_ref, o_ref,
                       m_sc, l_sc, acc_sc, *, nH, dh, scale):
    ki = pl.program_id(2)

    @pl.when(ki == 0)
    def _():
        m_sc[...] = jnp.full_like(m_sc, -jnp.inf)
        l_sc[...] = jnp.zeros_like(l_sc)
        acc_sc[...] = jnp.zeros_like(acc_sc)

    bias = mask_ref[0]                          # (1, tkv) additive mask, f32

    # Unrolled head loop with static per-head Ref slices: only dh lanes are
    # loaded per head (no whole (tq, H) value materialization / lane extracts).
    # Note QK^T / PV contract over dh (<=64) -> MXU under-fill is inherent here;
    # tiles are sized for the vreg budget (tq*tkv*4B <= 256 KiB), not MXU width.
    for h in range(nH):
        sl = slice(h * dh, (h + 1) * dh)
        qh = q_ref[0, :, sl]                    # (tq, dh) bf16
        kh = k_ref[0, :, sl]                    # (tkv, dh) bf16
        s = jax.lax.dot_general(qh, kh, (((1,), (1,)), ((), ())),
                                preferred_element_type=jnp.float32) * scale
        s = s + bias
        m_prev = m_sc[h]                        # (tq, 1)
        m_new = jnp.maximum(m_prev, jnp.max(s, axis=-1, keepdims=True))
        alpha = jnp.exp(m_prev - m_new)
        p = jnp.exp(s - m_new)
        l_sc[h] = alpha * l_sc[h] + jnp.sum(p, axis=-1, keepdims=True)
        # Per-head accumulator buffer: this write covers its full extent.
        acc_sc[h] = alpha * acc_sc[h] + jnp.dot(
            p.astype(v_ref.dtype), v_ref[0, :, sl],
            preferred_element_type=jnp.float32)
        m_sc[h] = m_new

    @pl.when(ki == pl.num_programs(2) - 1)
    def _():
        # Exact divide (finalize runs once per q tile); assemble a lane-dense
        # (tq, H) slab so the output is a single unmasked full-width store.
        outs = [(acc_sc[h] / l_sc[h]).astype(o_ref.dtype) for h in range(nH)]
        o_ref[0] = jnp.concatenate(outs, axis=-1)


def flash_attention(qkv, mask_add, nH, dh, tq=256, tkv=256):
    """qkv: (B, S, 3H) laid out [Q | K | V] along the last dim (no glue transposes).
    mask_add: (B, 1, S) additive mask. Returns context (B, S, H), lane-dense."""
    B, S, _ = qkv.shape
    H = nH * dh
    tq = _pick_tile(S, tq, (256, 128, 8))
    tkv = _pick_tile(S, tkv, (256, 128))
    grid = (B, S // tq, S // tkv)
    kernel = functools.partial(_flash_attn_kernel, nH=nH, dh=dh,
                               scale=1.0 / math.sqrt(dh))
    return pl.pallas_call(
        kernel,
        out_shape=jax.ShapeDtypeStruct((B, S, H), qkv.dtype),
        grid_spec=pltpu.PrefetchScalarGridSpec(
            num_scalar_prefetch=0,
            grid=grid,
            in_specs=[
                # Q / K / V are block-column slices (indices 0/1/2) of the same slab.
                pl.BlockSpec((1, tq, H), lambda b, qi, ki: (b, qi, 0)),
                pl.BlockSpec((1, tkv, H), lambda b, qi, ki: (b, ki, 1)),
                pl.BlockSpec((1, tkv, H), lambda b, qi, ki: (b, ki, 2)),
                pl.BlockSpec((1, 1, tkv), lambda b, qi, ki: (b, 0, ki)),
            ],
            out_specs=pl.BlockSpec((1, tq, H), lambda b, qi, ki: (b, qi, 0)),
            scratch_shapes=[
                pltpu.VMEM((nH, tq, 1), jnp.float32),    # running max
                pltpu.VMEM((nH, tq, 1), jnp.float32),    # running denom
                pltpu.VMEM((nH, tq, dh), jnp.float32),   # running numerator (per head)
            ],
        ),
        compiler_params=pltpu.CompilerParams(
            dimension_semantics=("parallel", "parallel", "arbitrary"),
            vmem_limit_bytes=_VMEM_LIMIT),
    )(qkv, qkv, qkv, mask_add)


# ----------------------------- model (glue) --------------------------------

def init_params(key, cfg):
    H, I, L = cfg["hidden"], cfg["intermediate"], cfg["layers"]

    def dense(k, fan_in, fan_out, dtype):
        w = 0.02 * jax.random.normal(k, (fan_in, fan_out), jnp.float32)
        return w.astype(dtype)

    keys = iter(jax.random.split(key, 8 * L + 4))
    layers = []
    for _ in range(L):
        layers.append(dict(
            qkv_w=dense(next(keys), H, 3 * H, _COMPUTE_DTYPE),
            qkv_b=jnp.zeros((3 * H,), jnp.float32),
            ao_w=dense(next(keys), H, H, _COMPUTE_DTYPE),
            ao_b=jnp.zeros((H,), jnp.float32),
            ln1_g=jnp.ones((H,), jnp.float32), ln1_b=jnp.zeros((H,), jnp.float32),
            i_w=dense(next(keys), H, I, _COMPUTE_DTYPE),
            i_b=jnp.zeros((I,), jnp.float32),
            o_w=dense(next(keys), I, H, _COMPUTE_DTYPE),
            o_b=jnp.zeros((H,), jnp.float32),
            ln2_g=jnp.ones((H,), jnp.float32), ln2_b=jnp.zeros((H,), jnp.float32),
        ))
    return dict(
        layers=layers,
        pool_w=dense(next(keys), H, H, jnp.float32),
        pool_b=jnp.zeros((H,), jnp.float32),
        fc_w=dense(next(keys), H, 1, jnp.float32),
        fc_b=jnp.zeros((1,), jnp.float32),
    )


def roberta_forward(params, hidden_states, attention_mask, cfg):
    B, S, H = hidden_states.shape
    nH = cfg["heads"]
    dh = H // nH
    eps = cfg["eps"]

    # HF-style extended additive attention mask: (B, 1, S), f32
    ext_mask = (1.0 - attention_mask.astype(jnp.float32))[:, None, :] * -10000.0

    x2d = hidden_states.astype(_COMPUTE_DTYPE).reshape(B * S, H)
    for lp in params["layers"]:
        # --- self attention ---
        qkv = linear_bias_act(x2d, lp["qkv_w"], lp["qkv_b"])          # (B*S, 3H)
        ctx = flash_attention(qkv.reshape(B, S, 3 * H), ext_mask, nH, dh)
        ctx2d = ctx.reshape(B * S, H)
        x2d = linear_residual_layernorm(ctx2d, lp["ao_w"], lp["ao_b"], x2d,
                                        lp["ln1_g"], lp["ln1_b"], eps)
        # --- feed-forward (GELU fused into the up-projection epilogue) ---
        inter = linear_bias_act(x2d, lp["i_w"], lp["i_b"], activation="gelu")
        x2d = linear_residual_layernorm(inter, lp["o_w"], lp["o_b"], x2d,
                                        lp["ln2_g"], lp["ln2_b"], eps)

    seq_out = x2d.reshape(B, S, H)
    # Pooler (Linear + tanh on token 0) and the Linear(H,1) head: N=1 outputs
    # waste MXU lanes and launch overhead dominates -> plain JAX f32.
    cls = seq_out[:, 0, :].astype(jnp.float32)
    pooled = jnp.tanh(cls @ params["pool_w"] + params["pool_b"])
    logits = pooled @ params["fc_w"] + params["fc_b"]
    return logits


# --------------------------------- main -------------------------------------

if __name__ == "__main__":
    # Small, TPU-friendly shapes (hidden multiple of 128 keeps every block lane-dense).
    cfg = dict(hidden=128, heads=4, intermediate=256, layers=2, eps=1e-12)
    B, S, H = 2, 8, cfg["hidden"]

    key = jax.random.PRNGKey(0)
    kp, kx = jax.random.split(key)
    params = init_params(kp, cfg)

    hidden_states = jax.random.normal(kx, (B, S, H), jnp.float32)
    attention_mask = jnp.ones((B, S), jnp.float32).at[1, 6:].set(0.0)

    fwd = jax.jit(functools.partial(roberta_forward, cfg=cfg))
    out = fwd(params, hidden_states, attention_mask)
    out = jax.block_until_ready(out)

    assert out.shape == (B, 1), out.shape
    assert out.dtype == jnp.float32
    assert bool(jnp.all(jnp.isfinite(out)))
    print("KERNEL_OK")
</pallas_src>

<mosaic_0001>
module attributes {stable_mosaic.version = 11 : i64} {
  func.func @_matmul_bias_fullk_kernel(%arg0: i32, %arg1: i32, %arg2: memref<16x128xbf16, #tpu.memory_space<vmem>>, %arg3: memref<128x384xbf16, #tpu.memory_space<vmem>>, %arg4: memref<1x384xf32, #tpu.memory_space<vmem>>, %arg5: memref<16x384xbf16, #tpu.memory_space<vmem>>) attributes {dimension_semantics = [#tpu.dimension_semantics<parallel>, #tpu.dimension_semantics<parallel>], iteration_bounds = array<i64: 1, 1>, scalar_prefetch = 0 : i64, scratch_operands = 0 : i64, tpu.core_type = #tpu.core_type<tc>, window_params = [{transform_indices = @transform_0, window_bounds = array<i64: 16, 128>}, {transform_indices = @transform_1, window_bounds = array<i64: 128, 384>}, {transform_indices = @transform_2, window_bounds = array<i64: 1, 384>}, {transform_indices = @transform_3, window_bounds = array<i64: 16, 384>}]} {
    %c0 = arith.constant 0 : index
    %c0_0 = arith.constant 0 : index
    %0 = vector.load %arg2[%c0, %c0_0] : memref<16x128xbf16, #tpu.memory_space<vmem>>, vector<16x128xbf16>
    %c0_1 = arith.constant 0 : index
    %c0_2 = arith.constant 0 : index
    %1 = vector.load %arg3[%c0_1, %c0_2] : memref<128x384xbf16, #tpu.memory_space<vmem>>, vector<128x384xbf16>
    %cst = arith.constant dense<0.000000e+00> : vector<16x384xf32>
    %2 = tpu.matmul %0, %1, %cst {dimension_numbers = #tpu.dot_dimension_numbers<[1], [0], [0], [1], [0, 0, 1, 1], [], []>} : vector<16x128xbf16>, vector<128x384xbf16>, vector<16x384xf32> -> vector<16x384xf32>
    %c0_3 = arith.constant 0 : index
    %c0_4 = arith.constant 0 : index
    %3 = vector.load %arg4[%c0_3, %c0_4] : memref<1x384xf32, #tpu.memory_space<vmem>>, vector<1x384xf32>
    %4 = vector.broadcast %3 : vector<1x384xf32> to vector<16x384xf32>
    %5 = arith.addf %2, %4 : vector<16x384xf32>
    %6 = arith.truncf %5 : vector<16x384xf32> to vector<16x384xbf16>
    %c0_5 = arith.constant 0 : index
    %c0_6 = arith.constant 0 : index
    %7 = vector.load %arg5[%c0_5, %c0_6] : memref<16x384xbf16, #tpu.memory_space<vmem>>, vector<16x384xbf16>
    tpu.vector_store %arg5[%c0_5, %c0_6], %6 {strides = array<i32>} : memref<16x384xbf16, #tpu.memory_space<vmem>>, vector<16x384xbf16>,
    return
  }
  func.func @transform_0(%arg0: i32, %arg1: i32) -> (i32, i32) {
    %c0_i32 = arith.constant 0 : i32
    %c0_i32_0 = arith.constant 0 : i32
    return %arg0, %c0_i32 : i32, i32
  }
  func.func @transform_1(%arg0: i32, %arg1: i32) -> (i32, i32) {
    %c0_i32 = arith.constant 0 : i32
    %c0_i32_0 = arith.constant 0 : i32
    return %c0_i32, %arg1 : i32, i32
  }
  func.func @transform_2(%arg0: i32, %arg1: i32) -> (i32, i32) {
    %c0_i32 = arith.constant 0 : i32
    %c0_i32_0 = arith.constant 0 : i32
    return %c0_i32, %arg1 : i32, i32
  }
  func.func @transform_3(%arg0: i32, %arg1: i32) -> (i32, i32) {
    %c0_i32 = arith.constant 0 : i32
    return %arg0, %arg1 : i32, i32
  }
}

module attributes {stable_mosaic.version = 11 : i64} {
  func.func @_matmul_bias_fullk_kernel(%arg0: i32, %arg1: i32, %arg2: memref<16x128xbf16, #tpu.memory_space<vmem>>, %arg3: memref<128x256xbf16, #tpu.memory_space<vmem>>, %arg4: memref<1x256xf32, #tpu.memory_space<vmem>>, %arg5: memref<16x256xbf16, #tpu.memory_space<vmem>>) attributes {dimension_semantics = [#tpu.dimension_semantics<parallel>, #tpu.dimension_semantics<parallel>], iteration_bounds = array<i64: 1, 1>, scalar_prefetch = 0 : i64, scratch_operands = 0 : i64, tpu.core_type = #tpu.core_type<tc>, window_params = [{transform_indices = @transform_0, window_bounds = array<i64: 16, 128>}, {transform_indices = @transform_1, window_bounds = array<i64: 128, 256>}, {transform_indices = @transform_2, window_bounds = array<i64: 1, 256>}, {transform_indices = @transform_3, window_bounds = array<i64: 16, 256>}]} {
    %c0 = arith.constant 0 : index
    %c0_0 = arith.constant 0 : index
    %0 = vector.load %arg2[%c0, %c0_0] : memref<16x128xbf16, #tpu.memory_space<vmem>>, vector<16x128xbf16>
    %c0_1 = arith.constant 0 : index
    %c0_2 = arith.constant 0 : index
    %1 = vector.load %arg3[%c0_1, %c0_2] : memref<128x256xbf16, #tpu.memory_space<vmem>>, vector<128x256xbf16>
    %cst = arith.constant dense<0.000000e+00> : vector<16x256xf32>
    %2 = tpu.matmul %0, %1, %cst {dimension_numbers = #tpu.dot_dimension_numbers<[1], [0], [0], [1], [0, 0, 1, 1], [], []>} : vector<16x128xbf16>, vector<128x256xbf16>, vector<16x256xf32> -> vector<16x256xf32>
    %c0_3 = arith.constant 0 : index
    %c0_4 = arith.constant 0 : index
    %3 = vector.load %arg4[%c0_3, %c0_4] : memref<1x256xf32, #tpu.memory_space<vmem>>, vector<1x256xf32>
    %4 = vector.broadcast %3 : vector<1x256xf32> to vector<16x256xf32>
    %5 = arith.addf %2, %4 : vector<16x256xf32>
    %cst_5 = arith.constant 5.000000e-01 : f32
    %6 = vector.broadcast %cst_5 : f32 to vector<16x256xf32>
    %7 = arith.mulf %6, %5 : vector<16x256xf32>
    %cst_6 = arith.constant 4.471500e-02 : f32
    %8 = vector.broadcast %cst_6 : f32 to vector<16x256xf32>
    %9 = arith.mulf %8, %5 : vector<16x256xf32>
    %10 = arith.mulf %9, %5 : vector<16x256xf32>
    %11 = arith.mulf %10, %5 : vector<16x256xf32>
    %12 = arith.addf %5, %11 : vector<16x256xf32>
    %cst_7 = arith.constant 0.797884583 : f32
    %13 = vector.broadcast %cst_7 : f32 to vector<16x256xf32>
    %14 = arith.mulf %13, %12 : vector<16x256xf32>
    %15 = math.tanh %14 : vector<16x256xf32>
    %cst_8 = arith.constant 1.000000e+00 : f32
    %16 = vector.broadcast %cst_8 : f32 to vector<16x256xf32>
    %17 = arith.addf %16, %15 : vector<16x256xf32>
    %18 = arith.mulf %7, %17 : vector<16x256xf32>
    %19 = arith.truncf %18 : vector<16x256xf32> to vector<16x256xbf16>
    %c0_9 = arith.constant 0 : index
    %c0_10 = arith.constant 0 : index
    %20 = vector.load %arg5[%c0_9, %c0_10] : memref<16x256xbf16, #tpu.memory_space<vmem>>, vector<16x256xbf16>
    tpu.vector_store %arg5[%c0_9, %c0_10], %19 {strides = array<i32>} : memref<16x256xbf16, #tpu.memory_space<vmem>>, vector<16x256xbf16>,
    return
  }
  func.func @transform_0(%arg0: i32, %arg1: i32) -> (i32, i32) {
    %c0_i32 = arith.constant 0 : i32
    %c0_i32_0 = arith.constant 0 : i32
    return %arg0, %c0_i32 : i32, i32
  }
  func.func @transform_1(%arg0: i32, %arg1: i32) -> (i32, i32) {
    %c0_i32 = arith.constant 0 : i32
    %c0_i32_0 = arith.constant 0 : i32
    return %c0_i32, %arg1 : i32, i32
  }
  func.func @transform_2(%arg0: i32, %arg1: i32) -> (i32, i32) {
    %c0_i32 = arith.constant 0 : i32
    %c0_i32_0 = arith.constant 0 : i32
    return %c0_i32, %arg1 : i32, i32
  }
  func.func @transform_3(%arg0: i32, %arg1: i32) -> (i32, i32) {
    %c0_i32 = arith.constant 0 : i32
    return %arg0, %arg1 : i32, i32
  }
}

module attributes {stable_mosaic.version = 11 : i64} {
  func.func @_flash_attn_kernel(%arg0: i32, %arg1: i32, %arg2: i32, %arg3: memref<1x8x128xbf16, #tpu.memory_space<vmem>>, %arg4: memref<1x8x128xbf16, #tpu.memory_space<vmem>>, %arg5: memref<1x8x128xbf16, #tpu.memory_space<vmem>>, %arg6: memref<1x1x8xf32, #tpu.memory_space<vmem>>, %arg7: memref<1x8x128xbf16, #tpu.memory_space<vmem>>, %arg8: memref<4x8x1xf32, #tpu.memory_space<vmem>>, %arg9: memref<4x8x1xf32, #tpu.memory_space<vmem>>, %arg10: memref<4x8x32xf32, #tpu.memory_space<vmem>>) attributes {dimension_semantics = [#tpu.dimension_semantics<parallel>, #tpu.dimension_semantics<parallel>, #tpu.dimension_semantics<arbitrary>], iteration_bounds = array<i64: 2, 1, 1>, scalar_prefetch = 0 : i64, scratch_operands = 3 : i64, tpu.core_type = #tpu.core_type<tc>, window_params = [{transform_indices = @transform_0, window_bounds = array<i64: 1, 8, 128>}, {transform_indices = @transform_1, window_bounds = array<i64: 1, 8, 128>}, {transform_indices = @transform_2, window_bounds = array<i64: 1, 8, 128>}, {transform_indices = @transform_3, window_bounds = array<i64: 1, 1, 8>}, {transform_indices = @transform_4, window_bounds = array<i64: 1, 8, 128>}]} {
    %c0_i32 = arith.constant 0 : i32
    %0 = arith.cmpi eq, %arg2, %c0_i32 : i32
    %1 = arith.extui %0 : i1 to i32
    %c0_i32_0 = arith.constant 0 : i32
    %2 = arith.cmpi ne, %1, %c0_i32_0 : i32
    scf.if %2 {
      %cst_126 = arith.constant 0xFF800000 : f32
      %180 = vector.broadcast %cst_126 : f32 to vector<4x8x1xf32>
      %c0_127 = arith.constant 0 : index
      %c0_128 = arith.constant 0 : index
      %c0_129 = arith.constant 0 : index
      %181 = vector.load %arg8[%c0_127, %c0_128, %c0_129] : memref<4x8x1xf32, #tpu.memory_space<vmem>>, vector<4x8x1xf32>
      tpu.vector_store %arg8[%c0_127, %c0_128, %c0_129], %180 {strides = array<i32>} : memref<4x8x1xf32, #tpu.memory_space<vmem>>, vector<4x8x1xf32>,
      %cst_130 = arith.constant 0.000000e+00 : f32
      %182 = vector.broadcast %cst_130 : f32 to vector<4x8x1xf32>
      %c0_131 = arith.constant 0 : index
      %c0_132 = arith.constant 0 : index
      %c0_133 = arith.constant 0 : index
      %183 = vector.load %arg9[%c0_131, %c0_132, %c0_133] : memref<4x8x1xf32, #tpu.memory_space<vmem>>, vector<4x8x1xf32>
      tpu.vector_store %arg9[%c0_131, %c0_132, %c0_133], %182 {strides = array<i32>} : memref<4x8x1xf32, #tpu.memory_space<vmem>>, vector<4x8x1xf32>,
      %cst_134 = arith.constant 0.000000e+00 : f32
      %184 = vector.broadcast %cst_134 : f32 to vector<4x8x32xf32>
      %c0_135 = arith.constant 0 : index
      %c0_136 = arith.constant 0 : index
      %c0_137 = arith.constant 0 : index
      %185 = vector.load %arg10[%c0_135, %c0_136, %c0_137] : memref<4x8x32xf32, #tpu.memory_space<vmem>>, vector<4x8x32xf32>
      tpu.vector_store %arg10[%c0_135, %c0_136, %c0_137], %184 {strides = array<i32>} : memref<4x8x32xf32, #tpu.memory_space<vmem>>, vector<4x8x32xf32>,
    } else {
    }
    %c0 = arith.constant 0 : index
    %c0_1 = arith.constant 0 : index
    %c0_2 = arith.constant 0 : index
    %3 = vector.load %arg6[%c0, %c0_1, %c0_2] : memref<1x1x8xf32, #tpu.memory_space<vmem>>, vector<1x1x8xf32>
    %4 = vector.shape_cast %3 : vector<1x1x8xf32> to vector<1x8xf32>
    %c0_3 = arith.constant 0 : index
    %c0_4 = arith.constant 0 : index
    %c0_5 = arith.constant 0 : index
    %5 = vector.load %arg3[%c0_3, %c0_4, %c0_5] : memref<1x8x128xbf16, #tpu.memory_space<vmem>>, vector<1x8x32xbf16>
    %6 = vector.shape_cast %5 : vector<1x8x32xbf16> to vector<8x32xbf16>
    %c0_6 = arith.constant 0 : index
    %c0_7 = arith.constant 0 : index
    %c0_8 = arith.constant 0 : index
    %7 = vector.load %arg4[%c0_6, %c0_7, %c0_8] : memref<1x8x128xbf16, #tpu.memory_space<vmem>>, vector<1x8x32xbf16>
    %8 = vector.shape_cast %7 : vector<1x8x32xbf16> to vector<8x32xbf16>
    %cst = arith.constant dense<0.000000e+00> : vector<8x8xf32>
    %9 = tpu.matmul %6, %8, %cst {dimension_numbers = #tpu.dot_dimension_numbers<[1], [1], [0], [0], [0, 0, 1, 0], [], []>} : vector<8x32xbf16>, vector<8x32xbf16>, vector<8x8xf32> -> vector<8x8xf32>
    %cst_9 = arith.constant 0.176776692 : f32
    %10 = vector.broadcast %cst_9 : f32 to vector<8x8xf32>
    %11 = arith.mulf %9, %10 : vector<8x8xf32>
    %12 = vector.broadcast %4 : vector<1x8xf32> to vector<8x8xf32>
    %13 = arith.addf %11, %12 : vector<8x8xf32>
    %c0_10 = arith.constant 0 : index
    %c0_11 = arith.constant 0 : index
    %c0_12 = arith.constant 0 : index
    %14 = vector.load %arg8[%c0_10, %c0_11, %c0_12] : memref<4x8x1xf32, #tpu.memory_space<vmem>>, vector<1x8x1xf32>
    %15 = vector.shape_cast %14 : vector<1x8x1xf32> to vector<8x1xf32>
    %cst_13 = arith.constant dense<0xFF800000> : vector<8xf32>
    %16 = vector.multi_reduction <maximumf>, %13, %cst_13 [1] : vector<8x8xf32> to vector<8xf32>
    %17 = vector.shape_cast %16 : vector<8xf32> to vector<8x1xf32>
    %18 = arith.maximumf %15, %17 : vector<8x1xf32>
    %19 = arith.subf %15, %18 : vector<8x1xf32>
    %20 = math.exp %19 : vector<8x1xf32>
    %21 = vector.broadcast %18 : vector<8x1xf32> to vector<8x8xf32>
    %22 = arith.subf %13, %21 : vector<8x8xf32>
    %23 = math.exp %22 : vector<8x8xf32>
    %c0_14 = arith.constant 0 : index
    %c0_15 = arith.constant 0 : index
    %c0_16 = arith.constant 0 : index
    %24 = vector.load %arg9[%c0_14, %c0_15, %c0_16] : memref<4x8x1xf32, #tpu.memory_space<vmem>>, vector<1x8x1xf32>
    %25 = vector.shape_cast %24 : vector<1x8x1xf32> to vector<8x1xf32>
    %26 = arith.mulf %20, %25 : vector<8x1xf32>
    %cst_17 = arith.constant dense<0.000000e+00> : vector<8xf32>
    %27 = vector.multi_reduction <add>, %23, %cst_17 [1] : vector<8x8xf32> to vector<8xf32>
    %28 = vector.shape_cast %27 : vector<8xf32> to vector<8x1xf32>
    %29 = arith.addf %26, %28 : vector<8x1xf32>
    %c0_18 = arith.constant 0 : index
    %c0_19 = arith.constant 0 : index
    %c0_20 = arith.constant 0 : index
    %30 = vector.load %arg9[%c0_18, %c0_19, %c0_20] : memref<4x8x1xf32, #tpu.memory_space<vmem>>, vector<1x8x1xf32>
    %31 = vector.shape_cast %30 : vector<1x8x1xf32> to vector<8x1xf32>
    %32 = vector.shape_cast %29 : vector<8x1xf32> to vector<1x8x1xf32>
    tpu.vector_store %arg9[%c0_18, %c0_19, %c0_20], %32 {strides = array<i32>} : memref<4x8x1xf32, #tpu.memory_space<vmem>>, vector<1x8x1xf32>,
    %c0_21 = arith.constant 0 : index
    %c0_22 = arith.constant 0 : index
    %c0_23 = arith.constant 0 : index
    %33 = vector.load %arg10[%c0_21, %c0_22, %c0_23] : memref<4x8x32xf32, #tpu.memory_space<vmem>>, vector<1x8x32xf32>
    %34 = vector.shape_cast %33 : vector<1x8x32xf32> to vector<8x32xf32>
    %35 = vector.broadcast %20 : vector<8x1xf32> to vector<8x32xf32>
    %36 = arith.mulf %35, %34 : vector<8x32xf32>
    %37 = arith.truncf %23 : vector<8x8xf32> to vector<8x8xbf16>
    %c0_24 = arith.constant 0 : index
    %c0_25 = arith.constant 0 : index
    %c0_26 = arith.constant 0 : index
    %38 = vector.load %arg5[%c0_24, %c0_25, %c0_26] : memref<1x8x128xbf16, #tpu.memory_space<vmem>>, vector<1x8x32xbf16>
    %39 = vector.shape_cast %38 : vector<1x8x32xbf16> to vector<8x32xbf16>
    %cst_27 = arith.constant dense<0.000000e+00> : vector<8x32xf32>
    %40 = tpu.matmul %37, %39, %cst_27 {dimension_numbers = #tpu.dot_dimension_numbers<[1], [0], [0], [1], [0, 0, 1, 1], [], []>} : vector<8x8xbf16>, vector<8x32xbf16>, vector<8x32xf32> -> vector<8x32xf32>
    %41 = arith.addf %36, %40 : vector<8x32xf32>
    %c0_28 = arith.constant 0 : index
    %c0_29 = arith.constant 0 : index
    %c0_30 = arith.constant 0 : index
    %42 = vector.load %arg10[%c0_28, %c0_29, %c0_30] : memref<4x8x32xf32, #tpu.memory_space<vmem>>, vector<1x8x32xf32>
    %43 = vector.shape_cast %42 : vector<1x8x32xf32> to vector<8x32xf32>
    %44 = vector.shape_cast %41 : vector<8x32xf32> to vector<1x8x32xf32>
    tpu.vector_store %arg10[%c0_28, %c0_29, %c0_30], %44 {strides = array<i32>} : memref<4x8x32xf32, #tpu.memory_space<vmem>>, vector<1x8x32xf32>,
    %c0_31 = arith.constant 0 : index
    %c0_32 = arith.constant 0 : index
    %c0_33 = arith.constant 0 : index
    %45 = vector.load %arg8[%c0_31, %c0_32, %c0_33] : memref<4x8x1xf32, #tpu.memory_space<vmem>>, vector<1x8x1xf32>
    %46 = vector.shape_cast %45 : vector<1x8x1xf32> to vector<8x1xf32>
    %47 = vector.shape_cast %18 : vector<8x1xf32> to vector<1x8x1xf32>
    tpu.vector_store %arg8[%c0_31, %c0_32, %c0_33], %47 {strides = array<i32>} : memref<4x8x1xf32, #tpu.memory_space<vmem>>, vector<1x8x1xf32>,
    %c0_34 = arith.constant 0 : index
    %c0_35 = arith.constant 0 : index
    %c32 = arith.constant 32 : index
    %48 = vector.load %arg3[%c0_34, %c0_35, %c32] : memref<1x8x128xbf16, #tpu.memory_space<vmem>>, vector<1x8x32xbf16>
    %49 = vector.shape_cast %48 : vector<1x8x32xbf16> to vector<8x32xbf16>
    %c0_36 = arith.constant 0 : index
    %c0_37 = arith.constant 0 : index
    %c32_38 = arith.constant 32 : index
    %50 = vector.load %arg4[%c0_36, %c0_37, %c32_38] : memref<1x8x128xbf16, #tpu.memory_space<vmem>>, vector<1x8x32xbf16>
    %51 = vector.shape_cast %50 : vector<1x8x32xbf16> to vector<8x32xbf16>
    %cst_39 = arith.constant dense<0.000000e+00> : vector<8x8xf32>
    %52 = tpu.matmul %49, %51, %cst_39 {dimension_numbers = #tpu.dot_dimension_numbers<[1], [1], [0], [0], [0, 0, 1, 0], [], []>} : vector<8x32xbf16>, vector<8x32xbf16>, vector<8x8xf32> -> vector<8x8xf32>
    %cst_40 = arith.constant 0.176776692 : f32
    %53 = vector.broadcast %cst_40 : f32 to vector<8x8xf32>
    %54 = arith.mulf %52, %53 : vector<8x8xf32>
    %55 = vector.broadcast %4 : vector<1x8xf32> to vector<8x8xf32>
    %56 = arith.addf %54, %55 : vector<8x8xf32>
    %c1 = arith.constant 1 : index
    %c0_41 = arith.constant 0 : index
    %c0_42 = arith.constant 0 : index
    %57 = vector.load %arg8[%c1, %c0_41, %c0_42] : memref<4x8x1xf32, #tpu.memory_space<vmem>>, vector<1x8x1xf32>
    %58 = vector.shape_cast %57 : vector<1x8x1xf32> to vector<8x1xf32>
    %cst_43 = arith.constant dense<0xFF800000> : vector<8xf32>
    %59 = vector.multi_reduction <maximumf>, %56, %cst_43 [1] : vector<8x8xf32> to vector<8xf32>
    %60 = vector.shape_cast %59 : vector<8xf32> to vector<8x1xf32>
    %61 = arith.maximumf %58, %60 : vector<8x1xf32>
    %62 = arith.subf %58, %61 : vector<8x1xf32>
    %63 = math.exp %62 : vector<8x1xf32>
    %64 = vector.broadcast %61 : vector<8x1xf32> to vector<8x8xf32>
    %65 = arith.subf %56, %64 : vector<8x8xf32>
    %66 = math.exp %65 : vector<8x8xf32>
    %c1_44 = arith.constant 1 : index
    %c0_45 = arith.constant 0 : index
    %c0_46 = arith.constant 0 : index
    %67 = vector.load %arg9[%c1_44, %c0_45, %c0_46] : memref<4x8x1xf32, #tpu.memory_space<vmem>>, vector<1x8x1xf32>
    %68 = vector.shape_cast %67 : vector<1x8x1xf32> to vector<8x1xf32>
    %69 = arith.mulf %63, %68 : vector<8x1xf32>
    %cst_47 = arith.constant dense<0.000000e+00> : vector<8xf32>
    %70 = vector.multi_reduction <add>, %66, %cst_47 [1] : vector<8x8xf32> to vector<8xf32>
    %71 = vector.shape_cast %70 : vector<8xf32> to vector<8x1xf32>
    %72 = arith.addf %69, %71 : vector<8x1xf32>
    %c1_48 = arith.constant 1 : index
    %c0_49 = arith.constant 0 : index
    %c0_50 = arith.constant 0 : index
    %73 = vector.load %arg9[%c1_48, %c0_49, %c0_50] : memref<4x8x1xf32, #tpu.memory_space<vmem>>, vector<1x8x1xf32>
    %74 = vector.shape_cast %73 : vector<1x8x1xf32> to vector<8x1xf32>
    %75 = vector.shape_cast %72 : vector<8x1xf32> to vector<1x8x1xf32>
    tpu.vector_store %arg9[%c1_48, %c0_49, %c0_50], %75 {strides = array<i32>} : memref<4x8x1xf32, #tpu.memory_space<vmem>>, vector<1x8x1xf32>,
    %c1_51 = arith.constant 1 : index
    %c0_52 = arith.constant 0 : index
    %c0_53 = arith.constant 0 : index
    %76 = vector.load %arg10[%c1_51, %c0_52, %c0_53] : memref<4x8x32xf32, #tpu.memory_space<vmem>>, vector<1x8x32xf32>
    %77 = vector.shape_cast %76 : vector<1x8x32xf32> to vector<8x32xf32>
    %78 = vector.broadcast %63 : vector<8x1xf32> to vector<8x32xf32>
    %79 = arith.mulf %78, %77 : vector<8x32xf32>
    %80 = arith.truncf %66 : vector<8x8xf32> to vector<8x8xbf16>
    %c0_54 = arith.constant 0 : index
    %c0_55 = arith.constant 0 : index
    %c32_56 = arith.constant 32 : index
    %81 = vector.load %arg5[%c0_54, %c0_55, %c32_56] : memref<1x8x128xbf16, #tpu.memory_space<vmem>>, vector<1x8x32xbf16>
    %82 = vector.shape_cast %81 : vector<1x8x32xbf16> to vector<8x32xbf16>
    %cst_57 = arith.constant dense<0.000000e+00> : vector<8x32xf32>
    %83 = tpu.matmul %80, %82, %cst_57 {dimension_numbers = #tpu.dot_dimension_numbers<[1], [0], [0], [1], [0, 0, 1, 1], [], []>} : vector<8x8xbf16>, vector<8x32xbf16>, vector<8x32xf32> -> vector<8x32xf32>
    %84 = arith.addf %79, %83 : vector<8x32xf32>
    %c1_58 = arith.constant 1 : index
    %c0_59 = arith.constant 0 : index
    %c0_60 = arith.constant 0 : index
    %85 = vector.load %arg10[%c1_58, %c0_59, %c0_60] : memref<4x8x32xf32, #tpu.memory_space<vmem>>, vector<1x8x32xf32>
    %86 = vector.shape_cast %85 : vector<1x8x32xf32> to vector<8x32xf32>
    %87 = vector.shape_cast %84 : vector<8x32xf32> to vector<1x8x32xf32>
    tpu.vector_store %arg10[%c1_58, %c0_59, %c0_60], %87 {strides = array<i32>} : memref<4x8x32xf32, #tpu.memory_space<vmem>>, vector<1x8x32xf32>,
    %c1_61 = arith.constant 1 : index
    %c0_62 = arith.constant 0 : index
    %c0_63 = arith.constant 0 : index
    %88 = vector.load %arg8[%c1_61, %c0_62, %c0_63] : memref<4x8x1xf32, #tpu.memory_space<vmem>>, vector<1x8x1xf32>
    %89 = vector.shape_cast %88 : vector<1x8x1xf32> to vector<8x1xf32>
    %90 = vector.shape_cast %61 : vector<8x1xf32> to vector<1x8x1xf32>
    tpu.vector_store %arg8[%c1_61, %c0_62, %c0_63], %90 {strides = array<i32>} : memref<4x8x1xf32, #tpu.memory_space<vmem>>, vector<1x8x1xf32>,
    %c0_64 = arith.constant 0 : index
    %c0_65 = arith.constant 0 : index
    %c64 = arith.constant 64 : index
    %91 = vector.load %arg3[%c0_64, %c0_65, %c64] : memref<1x8x128xbf16, #tpu.memory_space<vmem>>, vector<1x8x32xbf16>
    %92 = vector.shape_cast %91 : vector<1x8x32xbf16> to vector<8x32xbf16>
    %c0_66 = arith.constant 0 : index
    %c0_67 = arith.constant 0 : index
    %c64_68 = arith.constant 64 : index
    %93 = vector.load %arg4[%c0_66, %c0_67, %c64_68] : memref<1x8x128xbf16, #tpu.memory_space<vmem>>, vector<1x8x32xbf16>
    %94 = vector.shape_cast %93 : vector<1x8x32xbf16> to vector<8x32xbf16>
    %cst_69 = arith.constant dense<0.000000e+00> : vector<8x8xf32>
    %95 = tpu.matmul %92, %94, %cst_69 {dimension_numbers = #tpu.dot_dimension_numbers<[1], [1], [0], [0], [0, 0, 1, 0], [], []>} : vector<8x32xbf16>, vector<8x32xbf16>, vector<8x8xf32> -> vector<8x8xf32>
    %cst_70 = arith.constant 0.176776692 : f32
    %96 = vector.broadcast %cst_70 : f32 to vector<8x8xf32>
    %97 = arith.mulf %95, %96 : vector<8x8xf32>
    %98 = vector.broadcast %4 : vector<1x8xf32> to vector<8x8xf32>
    %99 = arith.addf %97, %98 : vector<8x8xf32>
    %c2 = arith.constant 2 : index
    %c0_71 = arith.constant 0 : index
    %c0_72 = arith.constant 0 : index
    %100 = vector.load %arg8[%c2, %c0_71, %c0_72] : memref<4x8x1xf32, #tpu.memory_space<vmem>>, vector<1x8x1xf32>
    %101 = vector.shape_cast %100 : vector<1x8x1xf32> to vector<8x1xf32>
    %cst_73 = arith.constant dense<0xFF800000> : vector<8xf32>
    %102 = vector.multi_reduction <maximumf>, %99, %cst_73 [1] : vector<8x8xf32> to vector<8xf32>
    %103 = vector.shape_cast %102 : vector<8xf32> to vector<8x1xf32>
    %104 = arith.maximumf %101, %103 : vector<8x1xf32>
    %105 = arith.subf %101, %104 : vector<8x1xf32>
    %106 = math.exp %105 : vector<8x1xf32>
    %107 = vector.broadcast %104 : vector<8x1xf32> to vector<8x8xf32>
    %108 = arith.subf %99, %107 : vector<8x8xf32>
    %109 = math.exp %108 : vector<8x8xf32>
    %c2_74 = arith.constant 2 : index
    %c0_75 = arith.constant 0 : index
    %c0_76 = arith.constant 0 : index
    %110 = vector.load %arg9[%c2_74, %c0_75, %c0_76] : memref<4x8x1xf32, #tpu.memory_space<vmem>>, vector<1x8x1xf32>
    %111 = vector.shape_cast %110 : vector<1x8x1xf32> to vector<8x1xf32>
    %112 = arith.mulf %106, %111 : vector<8x1xf32>
    %cst_77 = arith.constant dense<0.000000e+00> : vector<8xf32>
    %113 = vector.multi_reduction <add>, %109, %cst_77 [1] : vector<8x8xf32> to vector<8xf32>
    %114 = vector.shape_cast %113 : vector<8xf32> to vector<8x1xf32>
    %115 = arith.addf %112, %114 : vector<8x1xf32>
    %c2_78 = arith.constant 2 : index
    %c0_79 = arith.constant 0 : index
    %c0_80 = arith.constant 0 : index
    %116 = vector.load %arg9[%c2_78, %c0_79, %c0_80] : memref<4x8x1xf32, #tpu.memory_space<vmem>>, vector<1x8x1xf32>
    %117 = vector.shape_cast %116 : vector<1x8x1xf32> to vector<8x1xf32>
    %118 = vector.shape_cast %115 : vector<8x1xf32> to vector<1x8x1xf32>
    tpu.vector_store %arg9[%c2_78, %c0_79, %c0_80], %118 {strides = array<i32>} : memref<4x8x1xf32, #tpu.memory_space<vmem>>, vector<1x8x1xf32>,
    %c2_81 = arith.constant 2 : index
    %c0_82 = arith.constant 0 : index
    %c0_83 = arith.constant 0 : index
    %119 = vector.load %arg10[%c2_81, %c0_82, %c0_83] : memref<4x8x32xf32, #tpu.memory_space<vmem>>, vector<1x8x32xf32>
    %120 = vector.shape_cast %119 : vector<1x8x32xf32> to vector<8x32xf32>
    %121 = vector.broadcast %106 : vector<8x1xf32> to vector<8x32xf32>
    %122 = arith.mulf %121, %120 : vector<8x32xf32>
    %123 = arith.truncf %109 : vector<8x8xf32> to vector<8x8xbf16>
    %c0_84 = arith.constant 0 : index
    %c0_85 = arith.constant 0 : index
    %c64_86 = arith.constant 64 : index
    %124 = vector.load %arg5[%c0_84, %c0_85, %c64_86] : memref<1x8x128xbf16, #tpu.memory_space<vmem>>, vector<1x8x32xbf16>
    %125 = vector.shape_cast %124 : vector<1x8x32xbf16> to vector<8x32xbf16>
    %cst_87 = arith.constant dense<0.000000e+00> : vector<8x32xf32>
    %126 = tpu.matmul %123, %125, %cst_87 {dimension_numbers = #tpu.dot_dimension_numbers<[1], [0], [0], [1], [0, 0, 1, 1], [], []>} : vector<8x8xbf16>, vector<8x32xbf16>, vector<8x32xf32> -> vector<8x32xf32>
    %127 = arith.addf %122, %126 : vector<8x32xf32>
    %c2_88 = arith.constant 2 : index
    %c0_89 = arith.constant 0 : index
    %c0_90 = arith.constant 0 : index
    %128 = vector.load %arg10[%c2_88, %c0_89, %c0_90] : memref<4x8x32xf32, #tpu.memory_space<vmem>>, vector<1x8x32xf32>
    %129 = vector.shape_cast %128 : vector<1x8x32xf32> to vector<8x32xf32>
    %130 = vector.shape_cast %127 : vector<8x32xf32> to vector<1x8x32xf32>
    tpu.vector_store %arg10[%c2_88, %c0_89, %c0_90], %130 {strides = array<i32>} : memref<4x8x32xf32, #tpu.memory_space<vmem>>, vector<1x8x32xf32>,
    %c2_91 = arith.constant 2 : index
    %c0_92 = arith.constant 0 : index
    %c0_93 = arith.constant 0 : index
    %131 = vector.load %arg8[%c2_91, %c0_92, %c0_93] : memref<4x8x1xf32, #tpu.memory_space<vmem>>, vector<1x8x1xf32>
    %132 = vector.shape_cast %131 : vector<1x8x1xf32> to vector<8x1xf32>
    %133 = vector.shape_cast %104 : vector<8x1xf32> to vector<1x8x1xf32>
    tpu.vector_store %arg8[%c2_91, %c0_92, %c0_93], %133 {strides = array<i32>} : memref<4x8x1xf32, #tpu.memory_space<vmem>>, vector<1x8x1xf32>,
    %c0_94 = arith.constant 0 : index
    %c0_95 = arith.constant 0 : index
    %c96 = arith.constant 96 : index
    %134 = vector.load %arg3[%c0_94, %c0_95, %c96] : memref<1x8x128xbf16, #tpu.memory_space<vmem>>, vector<1x8x32xbf16>
    %135 = vector.shape_cast %134 : vector<1x8x32xbf16> to vector<8x32xbf16>
    %c0_96 = arith.constant 0 : index
    %c0_97 = arith.constant 0 : index
    %c96_98 = arith.constant 96 : index
    %136 = vector.load %arg4[%c0_96, %c0_97, %c96_98] : memref<1x8x128xbf16, #tpu.memory_space<vmem>>, vector<1x8x32xbf16>
    %137 = vector.shape_cast %136 : vector<1x8x32xbf16> to vector<8x32xbf16>
    %cst_99 = arith.constant dense<0.000000e+00> : vector<8x8xf32>
    %138 = tpu.matmul %135, %137, %cst_99 {dimension_numbers = #tpu.dot_dimension_numbers<[1], [1], [0], [0], [0, 0, 1, 0], [], []>} : vector<8x32xbf16>, vector<8x32xbf16>, vector<8x8xf32> -> vector<8x8xf32>
    %cst_100 = arith.constant 0.176776692 : f32
    %139 = vector.broadcast %cst_100 : f32 to vector<8x8xf32>
    %140 = arith.mulf %138, %139 : vector<8x8xf32>
    %141 = vector.broadcast %4 : vector<1x8xf32> to vector<8x8xf32>
    %142 = arith.addf %140, %141 : vector<8x8xf32>
    %c3 = arith.constant 3 : index
    %c0_101 = arith.constant 0 : index
    %c0_102 = arith.constant 0 : index
    %143 = vector.load %arg8[%c3, %c0_101, %c0_102] : memref<4x8x1xf32, #tpu.memory_space<vmem>>, vector<1x8x1xf32>
    %144 = vector.shape_cast %143 : vector<1x8x1xf32> to vector<8x1xf32>
    %cst_103 = arith.constant dense<0xFF800000> : vector<8xf32>
    %145 = vector.multi_reduction <maximumf>, %142, %cst_103 [1] : vector<8x8xf32> to vector<8xf32>
    %146 = vector.shape_cast %145 : vector<8xf32> to vector<8x1xf32>
    %147 = arith.maximumf %144, %146 : vector<8x1xf32>
    %148 = arith.subf %144, %147 : vector<8x1xf32>
    %149 = math.exp %148 : vector<8x1xf32>
    %150 = vector.broadcast %147 : vector<8x1xf32> to vector<8x8xf32>
    %151 = arith.subf %142, %150 : vector<8x8xf32>
    %152 = math.exp %151 : vector<8x8xf32>
    %c3_104 = arith.constant 3 : index
    %c0_105 = arith.constant 0 : index
    %c0_106 = arith.constant 0 : index
    %153 = vector.load %arg9[%c3_104, %c0_105, %c0_106] : memref<4x8x1xf32, #tpu.memory_space<vmem>>, vector<1x8x1xf32>
    %154 = vector.shape_cast %153 : vector<1x8x1xf32> to vector<8x1xf32>
    %155 = arith.mulf %149, %154 : vector<8x1xf32>
    %cst_107 = arith.constant dense<0.000000e+00> : vector<8xf32>
    %156 = vector.multi_reduction <add>, %152, %cst_107 [1] : vector<8x8xf32> to vector<8xf32>
    %157 = vector.shape_cast %156 : vector<8xf32> to vector<8x1xf32>
    %158 = arith.addf %155, %157 : vector<8x1xf32>
    %c3_108 = arith.constant 3 : index
    %c0_109 = arith.constant 0 : index
    %c0_110 = arith.constant 0 : index
    %159 = vector.load %arg9[%c3_108, %c0_109, %c0_110] : memref<4x8x1xf32, #tpu.memory_space<vmem>>, vector<1x8x1xf32>
    %160 = vector.shape_cast %159 : vector<1x8x1xf32> to vector<8x1xf32>
    %161 = vector.shape_cast %158 : vector<8x1xf32> to vector<1x8x1xf32>
    tpu.vector_store %arg9[%c3_108, %c0_109, %c0_110], %161 {strides = array<i32>} : memref<4x8x1xf32, #tpu.memory_space<vmem>>, vector<1x8x1xf32>,
    %c3_111 = arith.constant 3 : index
    %c0_112 = arith.constant 0 : index
    %c0_113 = arith.constant 0 : index
    %162 = vector.load %arg10[%c3_111, %c0_112, %c0_113] : memref<4x8x32xf32, #tpu.memory_space<vmem>>, vector<1x8x32xf32>
    %163 = vector.shape_cast %162 : vector<1x8x32xf32> to vector<8x32xf32>
    %164 = vector.broadcast %149 : vector<8x1xf32> to vector<8x32xf32>
    %165 = arith.mulf %164, %163 : vector<8x32xf32>
    %166 = arith.truncf %152 : vector<8x8xf32> to vector<8x8xbf16>
    %c0_114 = arith.constant 0 : index
    %c0_115 = arith.constant 0 : index
    %c96_116 = arith.constant 96 : index
    %167 = vector.load %arg5[%c0_114, %c0_115, %c96_116] : memref<1x8x128xbf16, #tpu.memory_space<vmem>>, vector<1x8x32xbf16>
    %168 = vector.shape_cast %167 : vector<1x8x32xbf16> to vector<8x32xbf16>
    %cst_117 = arith.constant dense<0.000000e+00> : vector<8x32xf32>
    %169 = tpu.matmul %166, %168, %cst_117 {dimension_numbers = #tpu.dot_dimension_numbers<[1], [0], [0], [1], [0, 0, 1, 1], [], []>} : vector<8x8xbf16>, vector<8x32xbf16>, vector<8x32xf32> -> vector<8x32xf32>
    %170 = arith.addf %165, %169 : vector<8x32xf32>
    %c3_118 = arith.constant 3 : index
    %c0_119 = arith.constant 0 : index
    %c0_120 = arith.constant 0 : index
    %171 = vector.load %arg10[%c3_118, %c0_119, %c0_120] : memref<4x8x32xf32, #tpu.memory_space<vmem>>, vector<1x8x32xf32>
    %172 = vector.shape_cast %171 : vector<1x8x32xf32> to vector<8x32xf32>
    %173 = vector.shape_cast %170 : vector<8x32xf32> to vector<1x8x32xf32>
    tpu.vector_store %arg10[%c3_118, %c0_119, %c0_120], %173 {strides = array<i32>} : memref<4x8x32xf32, #tpu.memory_space<vmem>>, vector<1x8x32xf32>,
    %c3_121 = arith.constant 3 : index
    %c0_122 = arith.constant 0 : index
    %c0_123 = arith.constant 0 : index
    %174 = vector.load %arg8[%c3_121, %c0_122, %c0_123] : memref<4x8x1xf32, #tpu.memory_space<vmem>>, vector<1x8x1xf32>
    %175 = vector.shape_cast %174 : vector<1x8x1xf32> to vector<8x1xf32>
    %176 = vector.shape_cast %147 : vector<8x1xf32> to vector<1x8x1xf32>
    tpu.vector_store %arg8[%c3_121, %c0_122, %c0_123], %176 {strides = array<i32>} : memref<4x8x1xf32, #tpu.memory_space<vmem>>, vector<1x8x1xf32>,
    %c0_i32_124 = arith.constant 0 : i32
    %177 = arith.cmpi eq, %arg2, %c0_i32_124 : i32
    %178 = arith.extui %177 : i1 to i32
    %c0_i32_125 = arith.constant 0 : i32
    %179 = arith.cmpi ne, %178, %c0_i32_125 : i32
    scf.if %179 {
      %c0_126 = arith.constant 0 : index
      %c0_127 = arith.constant 0 : index
      %c0_128 = arith.constant 0 : index
      %180 = vector.load %arg10[%c0_126, %c0_127, %c0_128] : memref<4x8x32xf32, #tpu.memory_space<vmem>>, vector<1x8x32xf32>
      %181 = vector.shape_cast %180 : vector<1x8x32xf32> to vector<8x32xf32>
      %c0_129 = arith.constant 0 : index
      %c0_130 = arith.constant 0 : index
      %c0_131 = arith.constant 0 : index
      %182 = vector.load %arg9[%c0_129, %c0_130, %c0_131] : memref<4x8x1xf32, #tpu.memory_space<vmem>>, vector<1x8x1xf32>
      %183 = vector.shape_cast %182 : vector<1x8x1xf32> to vector<8x1xf32>
      %184 = vector.broadcast %183 : vector<8x1xf32> to vector<8x32xf32>
      %185 = arith.divf %181, %184 : vector<8x32xf32>
      %186 = arith.truncf %185 : vector<8x32xf32> to vector<8x32xbf16>
      %c1_132 = arith.constant 1 : index
      %c0_133 = arith.constant 0 : index
      %c0_134 = arith.constant 0 : index
      %187 = vector.load %arg10[%c1_132, %c0_133, %c0_134] : memref<4x8x32xf32, #tpu.memory_space<vmem>>, vector<1x8x32xf32>
      %188 = vector.shape_cast %187 : vector<1x8x32xf32> to vector<8x32xf32>
      %c1_135 = arith.constant 1 : index
      %c0_136 = arith.constant 0 : index
      %c0_137 = arith.constant 0 : index
      %189 = vector.load %arg9[%c1_135, %c0_136, %c0_137] : memref<4x8x1xf32, #tpu.memory_space<vmem>>, vector<1x8x1xf32>
      %190 = vector.shape_cast %189 : vector<1x8x1xf32> to vector<8x1xf32>
      %191 = vector.broadcast %190 : vector<8x1xf32> to vector<8x32xf32>
      %192 = arith.divf %188, %191 : vector<8x32xf32>
      %193 = arith.truncf %192 : vector<8x32xf32> to vector<8x32xbf16>
      %c2_138 = arith.constant 2 : index
      %c0_139 = arith.constant 0 : index
      %c0_140 = arith.constant 0 : index
      %194 = vector.load %arg10[%c2_138, %c0_139, %c0_140] : memref<4x8x32xf32, #tpu.memory_space<vmem>>, vector<1x8x32xf32>
      %195 = vector.shape_cast %194 : vector<1x8x32xf32> to vector<8x32xf32>
      %c2_141 = arith.constant 2 : index
      %c0_142 = arith.constant 0 : index
      %c0_143 = arith.constant 0 : index
      %196 = vector.load %arg9[%c2_141, %c0_142, %c0_143] : memref<4x8x1xf32, #tpu.memory_space<vmem>>, vector<1x8x1xf32>
      %197 = vector.shape_cast %196 : vector<1x8x1xf32> to vector<8x1xf32>
      %198 = vector.broadcast %197 : vector<8x1xf32> to vector<8x32xf32>
      %199 = arith.divf %195, %198 : vector<8x32xf32>
      %200 = arith.truncf %199 : vector<8x32xf32> to vector<8x32xbf16>
      %c3_144 = arith.constant 3 : index
      %c0_145 = arith.constant 0 : index
      %c0_146 = arith.constant 0 : index
      %201 = vector.load %arg10[%c3_144, %c0_145, %c0_146] : memref<4x8x32xf32, #tpu.memory_space<vmem>>, vector<1x8x32xf32>
      %202 = vector.shape_cast %201 : vector<1x8x32xf32> to vector<8x32xf32>
      %c3_147 = arith.constant 3 : index
      %c0_148 = arith.constant 0 : index
      %c0_149 = arith.constant 0 : index
      %203 = vector.load %arg9[%c3_147, %c0_148, %c0_149] : memref<4x8x1xf32, #tpu.memory_space<vmem>>, vector<1x8x1xf32>
      %204 = vector.shape_cast %203 : vector<1x8x1xf32> to vector<8x1xf32>
      %205 = vector.broadcast %204 : vector<8x1xf32> to vector<8x32xf32>
      %206 = arith.divf %202, %205 : vector<8x32xf32>
      %207 = arith.truncf %206 : vector<8x32xf32> to vector<8x32xbf16>
      %208 = tpu.concatenate %186, %193, %200, %207 in 1 : vector<8x32xbf16>, vector<8x32xbf16>, vector<8x32xbf16>, vector<8x32xbf16> -> vector<8x128xbf16>
      %c0_150 = arith.constant 0 : index
      %c0_151 = arith.constant 0 : index
      %c0_152 = arith.constant 0 : index
      %209 = vector.load %arg7[%c0_150, %c0_151, %c0_152] : memref<1x8x128xbf16, #tpu.memory_space<vmem>>, vector<1x8x128xbf16>
      %210 = vector.shape_cast %209 : vector<1x8x128xbf16> to vector<8x128xbf16>
      %211 = vector.shape_cast %208 : vector<8x128xbf16> to vector<1x8x128xbf16>
      tpu.vector_store %arg7[%c0_150, %c0_151, %c0_152], %211 {strides = array<i32>} : memref<1x8x128xbf16, #tpu.memory_space<vmem>>, vector<1x8x128xbf16>,
    } else {
    }
    return
  }
  func.func @transform_0(%arg0: i32, %arg1: i32, %arg2: i32) -> (i32, i32, i32) {
    %c0_i32 = arith.constant 0 : i32
    %c0_i32_0 = arith.constant 0 : i32
    return %arg0, %arg1, %c0_i32 : i32, i32, i32
  }
  func.func @transform_1(%arg0: i32, %arg1: i32, %arg2: i32) -> (i32, i32, i32) {
    %c1_i32 = arith.constant 1 : i32
    %c0_i32 = arith.constant 0 : i32
    return %arg0, %arg2, %c1_i32 : i32, i32, i32
  }
  func.func @transform_2(%arg0: i32, %arg1: i32, %arg2: i32) -> (i32, i32, i32) {
    %c2_i32 = arith.constant 2 : i32
    %c0_i32 = arith.constant 0 : i32
    return %arg0, %arg2, %c2_i32 : i32, i32, i32
  }
  func.func @transform_3(%arg0: i32, %arg1: i32, %arg2: i32) -> (i32, i32, i32) {
    %c0_i32 = arith.constant 0 : i32
    %c0_i32_0 = arith.constant 0 : i32
    return %arg0, %c0_i32, %arg2 : i32, i32, i32
  }
  func.func @transform_4(%arg0: i32, %arg1: i32, %arg2: i32) -> (i32, i32, i32) {
    %c0_i32 = arith.constant 0 : i32
    %c0_i32_0 = arith.constant 0 : i32
    return %arg0, %arg1, %c0_i32 : i32, i32, i32
  }
}

module attributes {stable_mosaic.version = 11 : i64} {
  func.func @_matmul_res_ln_fullk_kernel(%arg0: i32, %arg1: memref<16x128xbf16, #tpu.memory_space<vmem>>, %arg2: memref<128x128xbf16, #tpu.memory_space<vmem>>, %arg3: memref<1x128xf32, #tpu.memory_space<vmem>>, %arg4: memref<16x128xbf16, #tpu.memory_space<vmem>>, %arg5: memref<1x128xf32, #tpu.memory_space<vmem>>, %arg6: memref<1x128xf32, #tpu.memory_space<vmem>>, %arg7: memref<16x128xbf16, #tpu.memory_space<vmem>>) attributes {dimension_semantics = [#tpu.dimension_semantics<parallel>], iteration_bounds = array<i64: 1>, scalar_prefetch = 0 : i64, scratch_operands = 0 : i64, tpu.core_type = #tpu.core_type<tc>, window_params = [{transform_indices = @transform_0, window_bounds = array<i64: 16, 128>}, {pipeline_mode = #tpu.pipeline_mode<synchronous>, transform_indices = @transform_1, window_bounds = array<i64: 128, 128>}, {pipeline_mode = #tpu.pipeline_mode<synchronous>, transform_indices = @transform_2, window_bounds = array<i64: 1, 128>}, {transform_indices = @transform_3, window_bounds = array<i64: 16, 128>}, {pipeline_mode = #tpu.pipeline_mode<synchronous>, transform_indices = @transform_4, window_bounds = array<i64: 1, 128>}, {pipeline_mode = #tpu.pipeline_mode<synchronous>, transform_indices = @transform_5, window_bounds = array<i64: 1, 128>}, {transform_indices = @transform_6, window_bounds = array<i64: 16, 128>}]} {
    %c0 = arith.constant 0 : index
    %c0_0 = arith.constant 0 : index
    %0 = vector.load %arg1[%c0, %c0_0] : memref<16x128xbf16, #tpu.memory_space<vmem>>, vector<16x128xbf16>
    %c0_1 = arith.constant 0 : index
    %c0_2 = arith.constant 0 : index
    %1 = vector.load %arg2[%c0_1, %c0_2] : memref<128x128xbf16, #tpu.memory_space<vmem>>, vector<128x128xbf16>
    %cst = arith.constant dense<0.000000e+00> : vector<16x128xf32>
    %2 = tpu.matmul %0, %1, %cst {dimension_numbers = #tpu.dot_dimension_numbers<[1], [0], [0], [1], [0, 0, 1, 1], [], []>} : vector<16x128xbf16>, vector<128x128xbf16>, vector<16x128xf32> -> vector<16x128xf32>
    %c0_3 = arith.constant 0 : index
    %c0_4 = arith.constant 0 : index
    %3 = vector.load %arg3[%c0_3, %c0_4] : memref<1x128xf32, #tpu.memory_space<vmem>>, vector<1x128xf32>
    %4 = vector.broadcast %3 : vector<1x128xf32> to vector<16x128xf32>
    %5 = arith.addf %2, %4 : vector<16x128xf32>
    %c0_5 = arith.constant 0 : index
    %c0_6 = arith.constant 0 : index
    %6 = vector.load %arg4[%c0_5, %c0_6] : memref<16x128xbf16, #tpu.memory_space<vmem>>, vector<16x128xbf16>
    %7 = arith.extf %6 : vector<16x128xbf16> to vector<16x128xf32>
    %c0_7 = arith.constant 0 : index
    %c0_8 = arith.constant 0 : index
    %8 = vector.load %arg5[%c0_7, %c0_8] : memref<1x128xf32, #tpu.memory_space<vmem>>, vector<1x128xf32>
    %c0_9 = arith.constant 0 : index
    %c0_10 = arith.constant 0 : index
    %9 = vector.load %arg6[%c0_9, %c0_10] : memref<1x128xf32, #tpu.memory_space<vmem>>, vector<1x128xf32>
    %10 = arith.addf %5, %7 : vector<16x128xf32>
    %cst_11 = arith.constant dense<0.000000e+00> : vector<16xf32>
    %11 = vector.multi_reduction <add>, %10, %cst_11 [1] : vector<16x128xf32> to vector<16xf32>
    %12 = vector.shape_cast %11 : vector<16xf32> to vector<16x1xf32>
    %cst_12 = arith.constant 1.280000e+02 : f32
    %13 = vector.broadcast %cst_12 : f32 to vector<16x1xf32>
    %14 = arith.divf %12, %13 : vector<16x1xf32>
    %15 = vector.broadcast %14 : vector<16x1xf32> to vector<16x128xf32>
    %16 = arith.subf %10, %15 : vector<16x128xf32>
    %17 = arith.mulf %16, %16 : vector<16x128xf32>
    %cst_13 = arith.constant dense<0.000000e+00> : vector<16xf32>
    %18 = vector.multi_reduction <add>, %17, %cst_13 [1] : vector<16x128xf32> to vector<16xf32>
    %19 = vector.shape_cast %18 : vector<16xf32> to vector<16x1xf32>
    %cst_14 = arith.constant 1.280000e+02 : f32
    %20 = vector.broadcast %cst_14 : f32 to vector<16x1xf32>
    %21 = arith.divf %19, %20 : vector<16x1xf32>
    %cst_15 = arith.constant 9.99999996E-13 : f32
    %22 = vector.broadcast %cst_15 : f32 to vector<16x1xf32>
    %23 = arith.addf %21, %22 : vector<16x1xf32>
    %24 = math.rsqrt %23 : vector<16x1xf32>
    %25 = vector.broadcast %24 : vector<16x1xf32> to vector<16x128xf32>
    %26 = arith.mulf %16, %25 : vector<16x128xf32>
    %27 = vector.broadcast %8 : vector<1x128xf32> to vector<16x128xf32>
    %28 = arith.mulf %26, %27 : vector<16x128xf32>
    %29 = vector.broadcast %9 : vector<1x128xf32> to vector<16x128xf32>
    %30 = arith.addf %28, %29 : vector<16x128xf32>
    %31 = arith.truncf %30 : vector<16x128xf32> to vector<16x128xbf16>
    %c0_16 = arith.constant 0 : index
    %c0_17 = arith.constant 0 : index
    %32 = vector.load %arg7[%c0_16, %c0_17] : memref<16x128xbf16, #tpu.memory_space<vmem>>, vector<16x128xbf16>
    tpu.vector_store %arg7[%c0_16, %c0_17], %31 {strides = array<i32>} : memref<16x128xbf16, #tpu.memory_space<vmem>>, vector<16x128xbf16>,
    return
  }
  func.func @transform_0(%arg0: i32) -> (i32, i32) {
    %c0_i32 = arith.constant 0 : i32
    %c0_i32_0 = arith.constant 0 : i32
    return %arg0, %c0_i32 : i32, i32
  }
  func.func @transform_1(%arg0: i32) -> (i32, i32) {
    %c0_i32 = arith.constant 0 : i32
    %c0_i32_0 = arith.constant 0 : i32
    %c0_i32_1 = arith.constant 0 : i32
    return %c0_i32, %c0_i32_0 : i32, i32
  }
  func.func @transform_2(%arg0: i32) -> (i32, i32) {
    %c0_i32 = arith.constant 0 : i32
    %c0_i32_0 = arith.constant 0 : i32
    %c0_i32_1 = arith.constant 0 : i32
    return %c0_i32, %c0_i32_0 : i32, i32
  }
  func.func @transform_3(%arg0: i32) -> (i32, i32) {
    %c0_i32 = arith.constant 0 : i32
    %c0_i32_0 = arith.constant 0 : i32
    return %arg0, %c0_i32 : i32, i32
  }
  func.func @transform_4(%arg0: i32) -> (i32, i32) {
    %c0_i32 = arith.constant 0 : i32
    %c0_i32_0 = arith.constant 0 : i32
    %c0_i32_1 = arith.constant 0 : i32
    return %c0_i32, %c0_i32_0 : i32, i32
  }
  func.func @transform_5(%arg0: i32) -> (i32, i32) {
    %c0_i32 = arith.constant 0 : i32
    %c0_i32_0 = arith.constant 0 : i32
    %c0_i32_1 = arith.constant 0 : i32
    return %c0_i32, %c0_i32_0 : i32, i32
  }
  func.func @transform_6(%arg0: i32) -> (i32, i32) {
    %c0_i32 = arith.constant 0 : i32
    %c0_i32_0 = arith.constant 0 : i32
    return %arg0, %c0_i32 : i32, i32
  }
}

module attributes {stable_mosaic.version = 11 : i64} {
  func.func @_matmul_bias_fullk_kernel(%arg0: i32, %arg1: i32, %arg2: memref<16x128xbf16, #tpu.memory_space<vmem>>, %arg3: memref<128x384xbf16, #tpu.memory_space<vmem>>, %arg4: memref<1x384xf32, #tpu.memory_space<vmem>>, %arg5: memref<16x384xbf16, #tpu.memory_space<vmem>>) attributes {dimension_semantics = [#tpu.dimension_semantics<parallel>, #tpu.dimension_semantics<parallel>], iteration_bounds = array<i64: 1, 1>, scalar_prefetch = 0 : i64, scratch_operands = 0 : i64, tpu.core_type = #tpu.core_type<tc>, window_params = [{transform_indices = @transform_0, window_bounds = array<i64: 16, 128>}, {transform_indices = @transform_1, window_bounds = array<i64: 128, 384>}, {transform_indices = @transform_2, window_bounds = array<i64: 1, 384>}, {transform_indices = @transform_3, window_bounds = array<i64: 16, 384>}]} {
    %c0 = arith.constant 0 : index
    %c0_0 = arith.constant 0 : index
    %0 = vector.load %arg2[%c0, %c0_0] : memref<16x128xbf16, #tpu.memory_space<vmem>>, vector<16x128xbf16>
    %c0_1 = arith.constant 0 : index
    %c0_2 = arith.constant 0 : index
    %1 = vector.load %arg3[%c0_1, %c0_2] : memref<128x384xbf16, #tpu.memory_space<vmem>>, vector<128x384xbf16>
    %cst = arith.constant dense<0.000000e+00> : vector<16x384xf32>
    %2 = tpu.matmul %0, %1, %cst {dimension_numbers = #tpu.dot_dimension_numbers<[1], [0], [0], [1], [0, 0, 1, 1], [], []>} : vector<16x128xbf16>, vector<128x384xbf16>, vector<16x384xf32> -> vector<16x384xf32>
    %c0_3 = arith.constant 0 : index
    %c0_4 = arith.constant 0 : index
    %3 = vector.load %arg4[%c0_3, %c0_4] : memref<1x384xf32, #tpu.memory_space<vmem>>, vector<1x384xf32>
    %4 = vector.broadcast %3 : vector<1x384xf32> to vector<16x384xf32>
    %5 = arith.addf %2, %4 : vector<16x384xf32>
    %6 = arith.truncf %5 : vector<16x384xf32> to vector<16x384xbf16>
    %c0_5 = arith.constant 0 : index
    %c0_6 = arith.constant 0 : index
    %7 = vector.load %arg5[%c0_5, %c0_6] : memref<16x384xbf16, #tpu.memory_space<vmem>>, vector<16x384xbf16>
    tpu.vector_store %arg5[%c0_5, %c0_6], %6 {strides = array<i32>} : memref<16x384xbf16, #tpu.memory_space<vmem>>, vector<16x384xbf16>,
    return
  }
  func.func @transform_0(%arg0: i32, %arg1: i32) -> (i32, i32) {
    %c0_i32 = arith.constant 0 : i32
    %c0_i32_0 = arith.constant 0 : i32
    return %arg0, %c0_i32 : i32, i32
  }
  func.func @transform_1(%arg0: i32, %arg1: i32) -> (i32, i32) {
    %c0_i32 = arith.constant 0 : i32
    %c0_i32_0 = arith.constant 0 : i32
    return %c0_i32, %arg1 : i32, i32
  }
  func.func @transform_2(%arg0: i32, %arg1: i32) -> (i32, i32) {
    %c0_i32 = arith.constant 0 : i32
    %c0_i32_0 = arith.constant 0 : i32
    return %c0_i32, %arg1 : i32, i32
  }
  func.func @transform_3(%arg0: i32, %arg1: i32) -> (i32, i32) {
    %c0_i32 = arith.constant 0 : i32
    return %arg0, %arg1 : i32, i32
  }
}

module attributes {stable_mosaic.version = 11 : i64} {
  func.func @_matmul_res_ln_fullk_kernel(%arg0: i32, %arg1: memref<16x256xbf16, #tpu.memory_space<vmem>>, %arg2: memref<256x128xbf16, #tpu.memory_space<vmem>>, %arg3: memref<1x128xf32, #tpu.memory_space<vmem>>, %arg4: memref<16x128xbf16, #tpu.memory_space<vmem>>, %arg5: memref<1x128xf32, #tpu.memory_space<vmem>>, %arg6: memref<1x128xf32, #tpu.memory_space<vmem>>, %arg7: memref<16x128xbf16, #tpu.memory_space<vmem>>) attributes {dimension_semantics = [#tpu.dimension_semantics<parallel>], iteration_bounds = array<i64: 1>, scalar_prefetch = 0 : i64, scratch_operands = 0 : i64, tpu.core_type = #tpu.core_type<tc>, window_params = [{transform_indices = @transform_0, window_bounds = array<i64: 16, 256>}, {pipeline_mode = #tpu.pipeline_mode<synchronous>, transform_indices = @transform_1, window_bounds = array<i64: 256, 128>}, {pipeline_mode = #tpu.pipeline_mode<synchronous>, transform_indices = @transform_2, window_bounds = array<i64: 1, 128>}, {transform_indices = @transform_3, window_bounds = array<i64: 16, 128>}, {pipeline_mode = #tpu.pipeline_mode<synchronous>, transform_indices = @transform_4, window_bounds = array<i64: 1, 128>}, {pipeline_mode = #tpu.pipeline_mode<synchronous>, transform_indices = @transform_5, window_bounds = array<i64: 1, 128>}, {transform_indices = @transform_6, window_bounds = array<i64: 16, 128>}]} {
    %c0 = arith.constant 0 : index
    %c0_0 = arith.constant 0 : index
    %0 = vector.load %arg1[%c0, %c0_0] : memref<16x256xbf16, #tpu.memory_space<vmem>>, vector<16x256xbf16>
    %c0_1 = arith.constant 0 : index
    %c0_2 = arith.constant 0 : index
    %1 = vector.load %arg2[%c0_1, %c0_2] : memref<256x128xbf16, #tpu.memory_space<vmem>>, vector<256x128xbf16>
    %cst = arith.constant dense<0.000000e+00> : vector<16x128xf32>
    %2 = tpu.matmul %0, %1, %cst {dimension_numbers = #tpu.dot_dimension_numbers<[1], [0], [0], [1], [0, 0, 1, 1], [], []>} : vector<16x256xbf16>, vector<256x128xbf16>, vector<16x128xf32> -> vector<16x128xf32>
    %c0_3 = arith.constant 0 : index
    %c0_4 = arith.constant 0 : index
    %3 = vector.load %arg3[%c0_3, %c0_4] : memref<1x128xf32, #tpu.memory_space<vmem>>, vector<1x128xf32>
    %4 = vector.broadcast %3 : vector<1x128xf32> to vector<16x128xf32>
    %5 = arith.addf %2, %4 : vector<16x128xf32>
    %c0_5 = arith.constant 0 : index
    %c0_6 = arith.constant 0 : index
    %6 = vector.load %arg4[%c0_5, %c0_6] : memref<16x128xbf16, #tpu.memory_space<vmem>>, vector<16x128xbf16>
    %7 = arith.extf %6 : vector<16x128xbf16> to vector<16x128xf32>
    %c0_7 = arith.constant 0 : index
    %c0_8 = arith.constant 0 : index
    %8 = vector.load %arg5[%c0_7, %c0_8] : memref<1x128xf32, #tpu.memory_space<vmem>>, vector<1x128xf32>
    %c0_9 = arith.constant 0 : index
    %c0_10 = arith.constant 0 : index
    %9 = vector.load %arg6[%c0_9, %c0_10] : memref<1x128xf32, #tpu.memory_space<vmem>>, vector<1x128xf32>
    %10 = arith.addf %5, %7 : vector<16x128xf32>
    %cst_11 = arith.constant dense<0.000000e+00> : vector<16xf32>
    %11 = vector.multi_reduction <add>, %10, %cst_11 [1] : vector<16x128xf32> to vector<16xf32>
    %12 = vector.shape_cast %11 : vector<16xf32> to vector<16x1xf32>
    %cst_12 = arith.constant 1.280000e+02 : f32
    %13 = vector.broadcast %cst_12 : f32 to vector<16x1xf32>
    %14 = arith.divf %12, %13 : vector<16x1xf32>
    %15 = vector.broadcast %14 : vector<16x1xf32> to vector<16x128xf32>
    %16 = arith.subf %10, %15 : vector<16x128xf32>
    %17 = arith.mulf %16, %16 : vector<16x128xf32>
    %cst_13 = arith.constant dense<0.000000e+00> : vector<16xf32>
    %18 = vector.multi_reduction <add>, %17, %cst_13 [1] : vector<16x128xf32> to vector<16xf32>
    %19 = vector.shape_cast %18 : vector<16xf32> to vector<16x1xf32>
    %cst_14 = arith.constant 1.280000e+02 : f32
    %20 = vector.broadcast %cst_14 : f32 to vector<16x1xf32>
    %21 = arith.divf %19, %20 : vector<16x1xf32>
    %cst_15 = arith.constant 9.99999996E-13 : f32
    %22 = vector.broadcast %cst_15 : f32 to vector<16x1xf32>
    %23 = arith.addf %21, %22 : vector<16x1xf32>
    %24 = math.rsqrt %23 : vector<16x1xf32>
    %25 = vector.broadcast %24 : vector<16x1xf32> to vector<16x128xf32>
    %26 = arith.mulf %16, %25 : vector<16x128xf32>
    %27 = vector.broadcast %8 : vector<1x128xf32> to vector<16x128xf32>
    %28 = arith.mulf %26, %27 : vector<16x128xf32>
    %29 = vector.broadcast %9 : vector<1x128xf32> to vector<16x128xf32>
    %30 = arith.addf %28, %29 : vector<16x128xf32>
    %31 = arith.truncf %30 : vector<16x128xf32> to vector<16x128xbf16>
    %c0_16 = arith.constant 0 : index
    %c0_17 = arith.constant 0 : index
    %32 = vector.load %arg7[%c0_16, %c0_17] : memref<16x128xbf16, #tpu.memory_space<vmem>>, vector<16x128xbf16>
    tpu.vector_store %arg7[%c0_16, %c0_17], %31 {strides = array<i32>} : memref<16x128xbf16, #tpu.memory_space<vmem>>, vector<16x128xbf16>,
    return
  }
  func.func @transform_0(%arg0: i32) -> (i32, i32) {
    %c0_i32 = arith.constant 0 : i32
    %c0_i32_0 = arith.constant 0 : i32
    return %arg0, %c0_i32 : i32, i32
  }
  func.func @transform_1(%arg0: i32) -> (i32, i32) {
    %c0_i32 = arith.constant 0 : i32
    %c0_i32_0 = arith.constant 0 : i32
    %c0_i32_1 = arith.constant 0 : i32
    return %c0_i32, %c0_i32_0 : i32, i32
  }
  func.func @transform_2(%arg0: i32) -> (i32, i32) {
    %c0_i32 = arith.constant 0 : i32
    %c0_i32_0 = arith.constant 0 : i32
    %c0_i32_1 = arith.constant 0 : i32
    return %c0_i32, %c0_i32_0 : i32, i32
  }
  func.func @transform_3(%arg0: i32) -> (i32, i32) {
    %c0_i32 = arith.constant 0 : i32
    %c0_i32_0 = arith.constant 0 : i32
    return %arg0, %c0_i32 : i32, i32
  }
  func.func @transform_4(%arg0: i32) -> (i32, i32) {
    %c0_i32 = arith.constant 0 : i32
    %c0_i32_0 = arith.constant 0 : i32
    %c0_i32_1 = arith.constant 0 : i32
    return %c0_i32, %c0_i32_0 : i32, i32
  }
  func.func @transform_5(%arg0: i32) -> (i32, i32) {
    %c0_i32 = arith.constant 0 : i32
    %c0_i32_0 = arith.constant 0 : i32
    %c0_i32_1 = arith.constant 0 : i32
    return %c0_i32, %c0_i32_0 : i32, i32
  }
  func.func @transform_6(%arg0: i32) -> (i32, i32) {
    %c0_i32 = arith.constant 0 : i32
    %c0_i32_0 = arith.constant 0 : i32
    return %arg0, %c0_i32 : i32, i32
  }
}

</mosaic_0001>

<bundles_post_ra>
// kernel: roberta_forward.10
= control target key start
LH: loop header
LB: loop body
LE: loop exit
PB: predicated region body
PF: predicated region fallthrough
CT: control target
= control target key end

     0   :  { %8 = vsyncpa [#allocation3], 0  ;;  %s452_s12 = smov [#allocation2]   ;;  %s508_s0 = inlined_call_operand.vmem [shape: bf16[16,128], index: 0, kind: input, shape index: {}]   ;;  %s509_s1 = inlined_call_operand.hbm [shape: bf16[128,384], index: 1, kind: input, shape index: {}]   ;;  %s510_s2 = inlined_call_operand.vmem [shape: f32[1,384], index: 2, kind: input, shape index: {}]   ;;  %s511_s3 = inlined_call_operand.vmem [shape: bf16[16,384], index: 3, kind: output, shape index: {}]  }
   0x1   :  { %s16_s13 = sshll.u32 %s452_s12, 4  ;;  %s428_s16 = scalar_lea.hbm %s509_s1, 3072  ;;  %s17_s13 = int_to_ptr.vmem [resolvable:$true] %s16_s13 }
   0x2   :  { %p429_p0 = scmp.ne.s32.totalorder %s509_s1, %s428_s16  ;;  %p432_p1 = scmp.lt.u32.totalorder %s428_s16, %s509_s1 }
   0x4   :  { %p434_p2 = pnand %p432_p1, %p429_p0 }
   0x6   :  { %437 = shalt.err (!%p434_p2)
}
   0x7   :  { %s438_s21 = scalar_lea.vmem %s17_s13, 3072  ;;  %p443_p4 = scmp.lt.s32.totalorder %s17_s13, %s17_s13 }
   0x8   :  { %p439_p3 = scmp.ne.s32.totalorder %s17_s13, %s438_s21  ;;  %p444_p5 = scmp.lt.s32.totalorder %s438_s21, %s438_s21 }
   0xa   :  { %p445_p6 = por %p444_p5, %p443_p4 }
   0xc   :  { %p446_p7 = pnand %p445_p6, %p439_p3 }
   0xe   :  { %449 = shalt.err (!%p446_p7)
}
   0xf   :  { %s453_s22 = smov 192   ;;  %s454_s23 = smov 12  }
  0x10   :  { %22 = dma.hbm_to_vmem [thread:$0]  %s509_s1, 3072, %s17_s13, [#allocation3], %s453_s22, %s453_s22, %s454_s23  }
  0x11   :  { %450 = dma.done.wait [#allocation3], 3072  }
  0x12   :  { %451 = vsyncadd [#allocation3], 4294964224  ;;  %v455_v0 = vmov 0.0   ;;  %vm456_vm0 = vmmov 0   ;;  %v457_v1 = vmov 0   ;;  %v427_v26 = vld [vmem:[%s508_s0] sm:$0xff]   ;;  %v65_v27 = vlaneseq }
  0x13   :  { %369 = vmatprep.subr.bf16.mxu1 %v455_v0  ;;  %385 = vmatprep.mubr.msk.bf16.mxu1 %vm456_vm0, %v455_v0  ;;  %v395_v2 = vld [vmem:[#allocation2 + $0x4] ss:$12 sps:$4 sm:$0xff]   ;;  %v397_v3 = vld [vmem:[#allocation2 + $0x8] ss:$12 sps:$4 sm:$0xff]   ;;  %v398_v4 = vld [vmem:[#allocation2] ss:$12 sps:$4 sm:$0xff]  }
  0x14   :  { %246 = vmatprep.mubr.bf16.mxu0 %v457_v1  ;;  %214 = vmatprep.subr.bf16.mxu0 %v395_v2  ;;  %v399_v5 = vld [vmem:[#allocation2 + $0x1c] ss:$12 sps:$4 sm:$0xff]   ;;  %v401_v6 = vld [vmem:[#allocation2 + $0x20] ss:$12 sps:$4 sm:$0xff]   ;;  %v402_v7 = vld [vmem:[#allocation2 + $0x18] ss:$12 sps:$4 sm:$0xff]  }
  0x15   :  { %370 = vmatpush3.bf16.msra.mxu1 %v397_v3  ;;  %215 = vmatpush1.bf16.msra.mxu0 %v398_v4  ;;  %v403_v8 = vld [vmem:[#allocation2 + $0x34] ss:$12 sps:$4 sm:$0xff]   ;;  %v405_v9 = vld [vmem:[#allocation2 + $0x38] ss:$12 sps:$4 sm:$0xff]   ;;  %v406_v10 = vld [vmem:[#allocation2 + $0x30] ss:$12 sps:$4 sm:$0xff]  }
  0x16   :  { %371 = vmatprep.subr.bf16.mxu1 %v455_v0  ;;  %216 = vmatprep.subr.bf16.mxu0 %v399_v5  ;;  %v407_v11 = vld [vmem:[#allocation2 + $0x4c] ss:$12 sps:$4 sm:$0xff]   ;;  %v409_v12 = vld [vmem:[#allocation2 + $0x50] ss:$12 sps:$4 sm:$0xff]   ;;  %v410_v13 = vld [vmem:[#allocation2 + $0x48] ss:$12 sps:$4 sm:$0xff]  }
  0x17   :  { %v411_v14 = vld [vmem:[#allocation2 + $0x64] ss:$12 sps:$4 sm:$0xff]   ;;  %v413_v15 = vld [vmem:[#allocation2 + $0x68] ss:$12 sps:$4 sm:$0xff]   ;;  %v414_v16 = vld [vmem:[#allocation2 + $0x60] ss:$12 sps:$4 sm:$0xff]  }
  0x18   :  { %v415_v17 = vld [vmem:[#allocation2 + $0x7c] ss:$12 sps:$4 sm:$0xff]   ;;  %v417_v18 = vld [vmem:[#allocation2 + $0x80] ss:$12 sps:$4 sm:$0xff]   ;;  %v418_v19 = vld [vmem:[#allocation2 + $0x78] ss:$12 sps:$4 sm:$0xff]  }
  0x19   :  { %372 = vmatpush3.bf16.msra.mxu1 %v401_v6  ;;  %217 = vmatpush1.bf16.msra.mxu0 %v402_v7  ;;  %v419_v20 = vld [vmem:[#allocation2 + $0x94] ss:$12 sps:$4 sm:$0xff]   ;;  %v421_v21 = vld [vmem:[#allocation2 + $0x98] ss:$12 sps:$4 sm:$0xff]   ;;  %v422_v22 = vld [vmem:[#allocation2 + $0x90] ss:$12 sps:$4 sm:$0xff]  }
  0x1a   :  { %373 = vmatprep.subr.bf16.mxu1 %v455_v0  ;;  %218 = vmatprep.subr.bf16.mxu0 %v403_v8  ;;  %v423_v23 = vld [vmem:[#allocation2 + $0xac] ss:$12 sps:$4 sm:$0xff]   ;;  %v425_v24 = vld [vmem:[#allocation2 + $0xb0] ss:$12 sps:$4 sm:$0xff]   ;;  %v426_v25 = vld [vmem:[#allocation2 + $0xa8] ss:$12 sps:$4 sm:$0xff]  }
  0x1b   :  { %v66_v28 = vshrl.u32 %v65_v27, 7  ;;  %v63_v30 = vld [vmem:[%s510_s2] sm:$0x7] }
  0x1d   :  { %374 = vmatpush3.bf16.msra.mxu1 %v405_v9  ;;  %219 = vmatpush1.bf16.msra.mxu0 %v406_v10  ;;  %v75_v29 = vsub.s32 2, %v66_v28  ;;  %v67_v31 = vsub.s32 0, %v66_v28  ;;  %v71_v32 = vsub.s32 1, %v66_v28 }
  0x1e   :  { %375 = vmatprep.subr.bf16.mxu1 %v455_v0  ;;  %220 = vmatprep.subr.bf16.mxu0 %v407_v11 }
  0x1f   :  { %v76_v33 = vrot.slane %v63_v30, %v75_v29  ;;  %v68_v34 = vrot.slane %v63_v30, %v67_v31  ;;  %v72_v35 = vrot.slane %v63_v30, %v71_v32 }
  0x21   :  { %376 = vmatpush3.bf16.msra.mxu1 %v409_v12  ;;  %221 = vmatpush1.bf16.msra.mxu0 %v410_v13 }
  0x22   :  { %377 = vmatprep.subr.bf16.mxu1 %v455_v0  ;;  %222 = vmatprep.subr.bf16.mxu0 %v411_v14 }
  0x25   :  { %378 = vmatpush3.bf16.msra.mxu1 %v413_v15  ;;  %223 = vmatpush1.bf16.msra.mxu0 %v414_v16 }
  0x26   :  { %379 = vmatprep.subr.bf16.mxu1 %v455_v0  ;;  %224 = vmatprep.subr.bf16.mxu0 %v415_v17 }
  0x29   :  { %380 = vmatpush3.bf16.msra.mxu1 %v417_v18  ;;  %225 = vmatpush1.bf16.msra.mxu0 %v418_v19 }
  0x2a   :  { %381 = vmatprep.subr.bf16.mxu1 %v455_v0  ;;  %226 = vmatprep.subr.bf16.mxu0 %v419_v20 }
  0x2d   :  { %382 = vmatpush3.bf16.msra.mxu1 %v421_v21  ;;  %227 = vmatpush1.bf16.msra.mxu0 %v422_v22 }
  0x2e   :  { %383 = vmatprep.subr.bf16.mxu1 %v455_v0  ;;  %228 = vmatprep.subr.bf16.mxu0 %v423_v23 }
  0x31   :  { %384 = vmatpush3.bf16.msra.mxu1 %v425_v24  ;;  %229 = vmatpush1.bf16.msra.mxu0 %v426_v25 }
  0x34   :  { %386 = vmatmul.mubr.bf16.vlgmr.msra.gmra.mrb[0].mxu1 %v427_v26  ;;  %247 = vmatmul.mubr.bf16.vlgmr.msra.gmra.mrb[0].mxu0 %v427_v26 }
 0x107   :  { %v291_v36 = vpop.f32.mrb[0].mxu1  ;;  %v248_v38 = vpop.f32.mrb[0].mxu0 }
 0x108   :  { %v292_v37 = vadd.f32 %v291_v36, %v76_v33  ;;  %v387_v39 = vpop.f32.mrb[1].mxu1  ;;  %v249_v40 = vadd.f32 %v248_v38, %v68_v34  ;;  %v250_v41 = vpop.f32.mrb[1].mxu0 }
 0x109   :  { %v294_v42 = vpop.f32.mrb[2].mxu1  ;;  %v251_v44 = vadd.f32 %v250_v41, %v72_v35  ;;  %v252_v46 = vpop.f32.mrb[2].mxu0 }
 0x10a   :  { %v357_v43 = vpack.c.bf16 %v292_v37, %v292_v37  ;;  %v295_v45 = vadd.f32 %v294_v42, %v76_v33  ;;  %v388_v47 = vpop.f32.mrb[3].mxu1  ;;  %v253_v48 = vadd.f32 %v252_v46, %v68_v34  ;;  %v254_v49 = vpop.f32.mrb[3].mxu0 }
 0x10b   :  { %v356_v50 = vpack.c.bf16 %v251_v44, %v249_v40  ;;  %v255_v52 = vadd.f32 %v254_v49, %v72_v35 }
 0x10c   :  { %319 = vst [vmem:[%s511_s3 + $0x8] sm:$0xf] %v357_v43  ;;  %v359_v51 = vpack.c.bf16 %v295_v45, %v295_v45 }
 0x10d   :  { %318 = vst [vmem:[%s511_s3] sm:$0xff] %v356_v50  ;;  %v358_v53 = vpack.c.bf16 %v255_v52, %v253_v48 }
 0x10e   :  { %321 = vst [vmem:[%s511_s3 + $0x14] sm:$0xf] %v359_v51 }
 0x10f   :  { %320 = vst [vmem:[%s511_s3 + $0xc] sm:$0xff] %v358_v53 }
 0x110   :  { %326 = vsyncpa [#allocation3], 1 }

// kernel: roberta_forward.13
= control target key start
LH: loop header
LB: loop body
LE: loop exit
PB: predicated region body
PF: predicated region fallthrough
CT: control target
= control target key end

     0   :  { %v283_v1 = vmov 0   ;;  %v35_v18 = vlaneseq  ;;  %s364_s1 = inlined_call_operand.vmem [shape: bf16[128,256], index: 1, kind: input, shape index: {}]   ;;  %s365_s0 = inlined_call_operand.vmem [shape: bf16[16,128], index: 0, kind: input, shape index: {}]   ;;  %s366_s2 = inlined_call_operand.vmem [shape: f32[1,256], index: 2, kind: input, shape index: {}]   ;;  %s367_s3 = inlined_call_operand.vmem [shape: bf16[16,256], index: 3, kind: output, shape index: {}]  }
   0x1   :  { %v250_v0 = vld [vmem:[%s364_s1 + $0x4] ss:$8 sps:$4 sm:$0xff]   ;;  %163 = vmatprep.mubr.bf16.mxu0 %v283_v1  ;;  %v252_v2 = vld [vmem:[%s364_s1] ss:$8 sps:$4 sm:$0xff]   ;;  %v253_v3 = vld [vmem:[%s364_s1 + $0x14] ss:$8 sps:$4 sm:$0xff]  }
   0x2   :  { %131 = vmatprep.subr.bf16.mxu0 %v250_v0  ;;  %v255_v4 = vld [vmem:[%s364_s1 + $0x10] ss:$8 sps:$4 sm:$0xff]   ;;  %v256_v5 = vld [vmem:[%s364_s1 + $0x24] ss:$8 sps:$4 sm:$0xff]   ;;  %v258_v6 = vld [vmem:[%s364_s1 + $0x20] ss:$8 sps:$4 sm:$0xff]  }
   0x3   :  { %132 = vmatpush1.bf16.msra.mxu0 %v252_v2  ;;  %v259_v7 = vld [vmem:[%s364_s1 + $0x34] ss:$8 sps:$4 sm:$0xff]   ;;  %v261_v8 = vld [vmem:[%s364_s1 + $0x30] ss:$8 sps:$4 sm:$0xff]   ;;  %v262_v9 = vld [vmem:[%s364_s1 + $0x44] ss:$8 sps:$4 sm:$0xff]  }
   0x4   :  { %133 = vmatprep.subr.bf16.mxu0 %v253_v3  ;;  %v264_v10 = vld [vmem:[%s364_s1 + $0x40] ss:$8 sps:$4 sm:$0xff]   ;;  %v265_v11 = vld [vmem:[%s364_s1 + $0x54] ss:$8 sps:$4 sm:$0xff]   ;;  %v267_v12 = vld [vmem:[%s364_s1 + $0x50] ss:$8 sps:$4 sm:$0xff]  }
   0x5   :  { %v268_v13 = vld [vmem:[%s364_s1 + $0x64] ss:$8 sps:$4 sm:$0xff]   ;;  %v270_v14 = vld [vmem:[%s364_s1 + $0x60] ss:$8 sps:$4 sm:$0xff]   ;;  %v271_v15 = vld [vmem:[%s364_s1 + $0x74] ss:$8 sps:$4 sm:$0xff]  }
   0x6   :  { %v273_v16 = vld [vmem:[%s364_s1 + $0x70] ss:$8 sps:$4 sm:$0xff]   ;;  %v274_v17 = vld [vmem:[%s365_s0] sm:$0xff]   ;;  %v36_v19 = vshrl.u32 %v35_v18, 7 }
   0x7   :  { %134 = vmatpush1.bf16.msra.mxu0 %v255_v4  ;;  %v33_v21 = vld [vmem:[%s366_s2] sm:$0x3] }
   0x8   :  { %135 = vmatprep.subr.bf16.mxu0 %v256_v5  ;;  %v37_v20 = vsub.s32 0, %v36_v19  ;;  %v41_v22 = vsub.s32 1, %v36_v19 }
   0xa   :  { %v38_v23 = vrot.slane %v33_v21, %v37_v20  ;;  %v42_v24 = vrot.slane %v33_v21, %v41_v22 }
   0xb   :  { %136 = vmatpush1.bf16.msra.mxu0 %v258_v6 }
   0xc   :  { %137 = vmatprep.subr.bf16.mxu0 %v259_v7 }
   0xf   :  { %138 = vmatpush1.bf16.msra.mxu0 %v261_v8 }
  0x10   :  { %139 = vmatprep.subr.bf16.mxu0 %v262_v9 }
  0x13   :  { %140 = vmatpush1.bf16.msra.mxu0 %v264_v10 }
  0x14   :  { %141 = vmatprep.subr.bf16.mxu0 %v265_v11 }
  0x17   :  { %142 = vmatpush1.bf16.msra.mxu0 %v267_v12 }
  0x18   :  { %143 = vmatprep.subr.bf16.mxu0 %v268_v13 }
  0x1b   :  { %144 = vmatpush1.bf16.msra.mxu0 %v270_v14 }
  0x1c   :  { %145 = vmatprep.subr.bf16.mxu0 %v271_v15 }
  0x1f   :  { %146 = vmatpush1.bf16.msra.mxu0 %v273_v16 }
  0x22   :  { %164 = vmatmul.mubr.bf16.vlgmr.msra.gmra.mrb[0].mxu0 %v274_v17 }
  0xf5   :  { %v165_v25 = vpop.f32.mrb[0].mxu0 }
  0xf6   :  { %v166_v26 = vadd.f32 %v165_v25, %v38_v23  ;;  %v167_v27 = vpop.f32.mrb[1].mxu0 }
  0xf7   :  { %v168_v28 = vadd.f32 %v167_v27, %v42_v24  ;;  %v169_v29 = vpop.f32.mrb[2].mxu0 }
  0xf8   :  { %v178_v30 = vmul.f32 0.044715, %v166_v26  ;;  %v170_v31 = vadd.f32 %v169_v29, %v38_v23  ;;  %v171_v32 = vpop.f32.mrb[3].mxu0  ;;  %v174_v55 = vmul.f32 0.5, %v166_v26 }
  0xf9   :  { %v179_v33 = vmul.f32 0.044715, %v168_v28  ;;  %v172_v34 = vadd.f32 %v171_v32, %v42_v24  ;;  %v175_v58 = vmul.f32 0.5, %v168_v28 }
  0xfa   :  { %v182_v35 = vmul.f32 %v178_v30, %v166_v26  ;;  %v180_v36 = vmul.f32 0.044715, %v170_v31  ;;  %v176_v62 = vmul.f32 0.5, %v170_v31 }
  0xfb   :  { %v183_v37 = vmul.f32 %v179_v33, %v168_v28  ;;  %v181_v38 = vmul.f32 0.044715, %v172_v34  ;;  %v177_v1 = vmul.f32 0.5, %v172_v34 }
  0xfc   :  { %v186_v39 = vmul.f32 %v182_v35, %v166_v26  ;;  %v184_v40 = vmul.f32 %v180_v36, %v170_v31 }
  0xfd   :  { %v187_v41 = vmul.f32 %v183_v37, %v168_v28  ;;  %v185_v42 = vmul.f32 %v181_v38, %v172_v34 }
  0xfe   :  { %v190_v43 = vadd.f32 %v186_v39, %v166_v26  ;;  %v188_v44 = vmul.f32 %v184_v40, %v170_v31 }
  0xff   :  { %v191_v45 = vadd.f32 %v187_v41, %v168_v28  ;;  %v189_v46 = vmul.f32 %v185_v42, %v172_v34 }
 0x100   :  { %v194_v47 = vmul.f32 0.7978846, %v190_v43  ;;  %v192_v48 = vadd.f32 %v188_v44, %v170_v31 }
 0x101   :  { %v195_v49 = vmul.f32 0.7978846, %v191_v45  ;;  %v193_v50 = vadd.f32 %v189_v46, %v172_v34 }
 0x102   :  { %275 = vtanh.f32 %v194_v47  ;;  %v196_v51 = vmul.f32 0.7978846, %v192_v48 }
 0x103   :  { %277 = vtanh.f32 %v195_v49  ;;  %v197_v52 = vmul.f32 0.7978846, %v193_v50 }
 0x104   :  { %279 = vtanh.f32 %v196_v51 }
 0x105   :  { %281 = vtanh.f32 %v197_v52 }
 0x10c   :  { %v276_v53 = vpop.eup %275 }
 0x10d   :  { %v278_v54 = vpop.eup %277  ;;  %v202_v56 = vadd.f32 1.0, %v276_v53 }
 0x10e   :  { %v280_v57 = vpop.eup %279  ;;  %v203_v59 = vadd.f32 1.0, %v278_v54 }
 0x10f   :  { %v282_v60 = vpop.eup %281  ;;  %v206_v61 = vmul.f32 %v202_v56, %v174_v55  ;;  %v204_v63 = vadd.f32 1.0, %v280_v57 }
 0x110   :  { %v207_v0 = vmul.f32 %v203_v59, %v175_v58  ;;  %v205_v2 = vadd.f32 1.0, %v282_v60 }
 0x111   :  { %v208_v3 = vmul.f32 %v204_v63, %v176_v62 }
 0x112   :  { %v247_v4 = vpack.c.bf16 %v207_v0, %v206_v61  ;;  %v209_v5 = vmul.f32 %v205_v2, %v177_v1 }
 0x114   :  { %222 = vst [vmem:[%s367_s3] sm:$0xff] %v247_v4  ;;  %v248_v6 = vpack.c.bf16 %v209_v5, %v208_v3 }
 0x116   :  { %223 = vst [vmem:[%s367_s3 + $0x8] sm:$0xff] %v248_v6 }

// kernel: roberta_forward.12
= control target key start
LH: loop header
LB: loop body
LE: loop exit
PB: predicated region body
PF: predicated region fallthrough
CT: control target
= control target key end

     0   :  { %v274_v0 = vmov 0.0   ;;  %vm275_vm0 = vmmov 0   ;;  %s353_s1 = inlined_call_operand.vmem [shape: bf16[128,128], index: 1, kind: input, shape index: {}]   ;;  %s354_s0 = inlined_call_operand.vmem [shape: bf16[16,128], index: 0, kind: input, shape index: {}]   ;;  %s355_s3 = inlined_call_operand.vmem [shape: bf16[16,128], index: 3, kind: input, shape index: {}]   ;;  %s356_s2 = inlined_call_operand.vmem [shape: f32[1,128], index: 2, kind: input, shape index: {}]   ;;  %s357_s4 = inlined_call_operand.vmem [shape: f32[1,128], index: 4, kind: input, shape index: {}]   ;;  %s358_s5 = inlined_call_operand.vmem [shape: f32[1,128], index: 5, kind: input, shape index: {}]   ;;  %s359_s6 = inlined_call_operand.vmem [shape: bf16[16,128], index: 6, kind: output, shape index: {}]  }
   0x1   :  { %239 = vmatprep.subr.bf16.mxu0 %v274_v0  ;;  %v261_v1 = vld [vmem:[%s353_s1] sm:$0xff]   ;;  %255 = vmatprep.mubr.msk.bf16.mxu0 %vm275_vm0, %v274_v0  ;;  %v262_v2 = vld [vmem:[%s353_s1 + $0x8] sm:$0xff]   ;;  %v263_v3 = vld [vmem:[%s353_s1 + $0x10] sm:$0xff]  }
   0x2   :  { %240 = vmatpush3.bf16.msra.mxu0 %v261_v1  ;;  %v264_v4 = vld [vmem:[%s353_s1 + $0x18] sm:$0xff]   ;;  %v265_v5 = vld [vmem:[%s353_s1 + $0x20] sm:$0xff]   ;;  %v266_v6 = vld [vmem:[%s353_s1 + $0x28] sm:$0xff]  }
   0x3   :  { %241 = vmatprep.subr.bf16.mxu0 %v274_v0  ;;  %v267_v7 = vld [vmem:[%s353_s1 + $0x30] sm:$0xff]   ;;  %v268_v8 = vld [vmem:[%s353_s1 + $0x38] sm:$0xff]   ;;  %v269_v9 = vld [vmem:[%s354_s0] sm:$0xff]  }
   0x4   :  { %v222_v10 = vld [vmem:[%s355_s3] sm:$0xff]  }
   0x5   :  { %v205_v11 = vld [vmem:[%s356_s2] ss:$0 sm:$0xff]  ;;  %v223_v12 = vunpack.c.l.bf16 %v222_v10  ;;  %v224_v20 = vunpack.c.h.bf16 %v222_v10 }
   0x6   :  { %242 = vmatpush3.bf16.msra.mxu0 %v262_v2  ;;  %v215_v38 = vld [vmem:[%s357_s4] ss:$0 sm:$0xff] }
   0x7   :  { %243 = vmatprep.subr.bf16.mxu0 %v274_v0  ;;  %v216_v42 = vld [vmem:[%s358_s5] ss:$0 sm:$0xff] }
   0xa   :  { %244 = vmatpush3.bf16.msra.mxu0 %v263_v3 }
   0xb   :  { %245 = vmatprep.subr.bf16.mxu0 %v274_v0 }
   0xe   :  { %246 = vmatpush3.bf16.msra.mxu0 %v264_v4 }
   0xf   :  { %247 = vmatprep.subr.bf16.mxu0 %v274_v0 }
  0x12   :  { %248 = vmatpush3.bf16.msra.mxu0 %v265_v5 }
  0x13   :  { %249 = vmatprep.subr.bf16.mxu0 %v274_v0 }
  0x16   :  { %250 = vmatpush3.bf16.msra.mxu0 %v266_v6 }
  0x17   :  { %251 = vmatprep.subr.bf16.mxu0 %v274_v0 }
  0x1a   :  { %252 = vmatpush3.bf16.msra.mxu0 %v267_v7 }
  0x1b   :  { %253 = vmatprep.subr.bf16.mxu0 %v274_v0 }
  0x1e   :  { %254 = vmatpush3.bf16.msra.mxu0 %v268_v8 }
  0x21   :  { %256 = vmatmul.mubr.bf16.vlgmr.msra.gmra.mrb[0].mxu0 %v269_v9 }
  0xf4   :  { %v137_v13 = vpop.f32.mrb[0].mxu0 }
  0xf5   :  { %v138_v14 = vadd.f32 %v205_v11, %v137_v13  ;;  %v257_v15 = vpop.f32.mrb[1].mxu0 }
  0xf6   :  { %v140_v16 = vpop.f32.mrb[2].mxu0 }
  0xf7   :  { %v141_v17 = vadd.f32 %v205_v11, %v140_v16  ;;  %v258_v18 = vpop.f32.mrb[3].mxu0  ;;  %v150_v19 = vadd.f32 %v223_v12, %v138_v14 }
  0xf9   :  { %152 = vadd.xlane.f32.xlu0 %v150_v19  ;;  %v151_v21 = vadd.f32 %v224_v20, %v141_v17 }
  0xfd   :  { %154 = vadd.xlane.f32.xlu0 %v151_v21 }
 0x186   :  { %v153_v22 = vpop.xlane.xlu0 %152 }
 0x187   :  { %v157_v23 = vmul.f32 0.0078125, %v153_v22 }
 0x189   :  { %v159_v24 = vsub.f32 %v150_v19, %v157_v23 }
 0x18a   :  { %v155_v25 = vpop.xlane.xlu0 %154 }
 0x18b   :  { %v158_v26 = vmul.f32 0.0078125, %v155_v25  ;;  %v161_v27 = vmul.f32 %v159_v24, %v159_v24 }
 0x18d   :  { %v160_v28 = vsub.f32 %v151_v21, %v158_v26  ;;  %163 = vadd.xlane.f32.xlu1 %v161_v27 }
 0x18f   :  { %v162_v29 = vmul.f32 %v160_v28, %v160_v28 }
 0x191   :  { %165 = vadd.xlane.f32.xlu1 %v162_v29 }
 0x21a   :  { %v164_v30 = vpop.xlane.xlu1 %163 }
 0x21b   :  { %v167_v31 = vmul.f32 0.0078125, %v164_v30 }
 0x21d   :  { %v169_v32 = vadd.f32 1e-12, %v167_v31 }
 0x21e   :  { %v166_v33 = vpop.xlane.xlu1 %165 }
 0x21f   :  { %270 = vrsqrt.f32 %v169_v32  ;;  %v168_v34 = vmul.f32 0.0078125, %v166_v33 }
 0x221   :  { %v170_v35 = vadd.f32 1e-12, %v168_v34 }
 0x223   :  { %272 = vrsqrt.f32 %v170_v35 }
 0x229   :  { %v271_v36 = vpop.eup %270 }
 0x22a   :  { %v173_v37 = vmul.f32 %v271_v36, %v159_v24 }
 0x22c   :  { %v181_v40 = vmul.f32 %v215_v38, %v173_v37 }
 0x22d   :  { %v273_v39 = vpop.eup %272 }
 0x22e   :  { %v174_v41 = vmul.f32 %v273_v39, %v160_v28  ;;  %v189_v44 = vadd.f32 %v216_v42, %v181_v40 }
 0x230   :  { %v182_v43 = vmul.f32 %v215_v38, %v174_v41 }
 0x232   :  { %v190_v45 = vadd.f32 %v216_v42, %v182_v43 }
 0x234   :  { %v228_v46 = vpack.c.bf16 %v190_v45, %v189_v44 }
 0x236   :  { %229 = vst [vmem:[%s359_s6] sm:$0xff] %v228_v46  }

// kernel: roberta_forward.11
= control target key start
LH: loop header
LB: loop body
LE: loop exit
PB: predicated region body
PF: predicated region fallthrough
CT: control target
= control target key end

     0   :  { %s1374_s15 = smov 0   ;;  %s1376_s16 = smov 0   ;;  %s1576_s0 = inlined_call_operand.vmem [shape: bf16[2,8,384], index: 0, kind: input, shape index: {}, may-alias: {0,1,2}]   ;;  %s1577_s1 = inlined_call_operand.vmem [shape: bf16[2,8,384], index: 1, kind: input, shape index: {}, may-alias: {0,1,2}]   ;;  %s1578_s2 = inlined_call_operand.vmem [shape: bf16[2,8,384], index: 2, kind: input, shape index: {}, may-alias: {0,1,2}]   ;;  %s1579_s3 = inlined_call_operand.vmem [shape: f32[2,1,8], index: 3, kind: input, shape index: {}]   ;;  %s1580_s4 = inlined_call_operand.vmem [shape: bf16[2,8,128], index: 4, kind: output, shape index: {}]  }
   0x1   :  { %s1378_s17 = smov 0  }
   0x2 LB: > { %s33_s18 = sadd.s32 1, %s1336_s16  ;;  %p1154_p0 = scmp.ge.s32.totalorder %s1340_s17, 1  ;;  %s1340_s17 = sphi %s1378_s17, %s14_s17   ;;  %s1336_s16 = sphi %s1376_s16, %s1582_s16   ;;  %s1332_s15 = sphi %s1374_s15, %s1581_s15  }
   0x3   : > { %p35_p1 = scmp.ge.s32.totalorder %s33_s18, 2  ;;  %p236_p2 = scmp.lt.s32.totalorder %s1340_s17, 3 }
   0x5   : > { %s1584_s18 = smov (%p35_p1, %s33_s18), 0  ;;  %p237_p3 = pnand %p1154_p0, %p236_p2 }
   0x6   : > { %p294_p4 = scmp.lt.s32.totalorder (!%p237_p3), %s1332_s15, 1  ;;  %vm350_vm0 = vcmask (!%p237_p3), 261120   ;;  %v1342_v0 = vmov (!%p237_p3), 0.0   ;;  %vm1343_vm1 = vmmov (!%p237_p3), 0   ;;  %vm341_vm2 = vcmask (!%p237_p3), 7168   ;;  %s1346_s29 = smov (!%p237_p3), 96  }
   0x7   : > { %240 = sbr.rel (%p237_p3) target bundleno = 1474 (0x5c2), region = 36  ;;  %1203 = vmatprep.subr.bf16.mxu0 (!%p237_p3), %v1342_v0  ;;  %351 = vst.msk [vmem:[#allocation4] sm:$0xff] (!%p237_p3), %vm350_vm0, %v1342_v0  ;;  %352 = vst.msk [vmem:[#allocation4 + $0x8] sm:$0xff] (!%p237_p3), %vm350_vm0, %v1342_v0  ;;  %1205 = vmatprep.mubr.msk.bf16.mxu0 (!%p237_p3), %vm1343_vm1, %v1342_v0  ;;  %v1344_v4 = vmov (!%p237_p3), -inf   ;;  %vm414_vm3 = vcmask (!%p237_p3), 64512   ;;  %v1345_v13 = vmov (!%p237_p3), 0  }
   0x8   : > { %353 = vst.msk [vmem:[#allocation4 + $0x10] sm:$0xff] (!%p237_p3), %vm350_vm0, %v1342_v0  ;;  %354 = vst.msk [vmem:[#allocation4 + $0x18] sm:$0xff] (!%p237_p3), %vm350_vm0, %v1342_v0  ;;  %1209 = vmatprep.subr.bf16.mxu1 (!%p237_p3), %v1342_v0  ;;  %1211 = vmatprep.mubr.msk.bf16.mxu1 (!%p237_p3), %vm1343_vm1, %v1342_v0  ;;  %s1347_s30 = smov (!%p237_p3), 64   ;;  %s1348_s5 = smov (!%p237_p3), 32   ;;  %vm450_vm4 = vcmask (!%p237_p3), 1043456   ;;  %vm999_vm5 = vcmask (!%p237_p3), 523264  }
   0x9   : > { %342 = vst.msk [vmem:[#allocation2] sm:$0xff] (!%p237_p3), %vm341_vm2, %v1344_v4  ;;  %343 = vst.msk [vmem:[#allocation2 + $0x8] sm:$0xff] (!%p237_p3), %vm341_vm2, %v1344_v4  ;;  %1283 = vset.pattern.permute.xlu0 (!%p237_p3), %v1345_v13  ;;  %1284 = vset.pattern.permute.xlu1 (!%p237_p3), %v1345_v13  ;;  %vm1002_vm6 = vcmask (!%p237_p3), 785408  }
   0xa   : > { %344 = vst.msk [vmem:[#allocation2 + $0x10] sm:$0xff] (!%p237_p3), %vm341_vm2, %v1344_v4  ;;  %345 = vst.msk [vmem:[#allocation2 + $0x18] sm:$0xff] (!%p237_p3), %vm341_vm2, %v1344_v4 }
   0xb   : > { %346 = vst.msk [vmem:[#allocation3] sm:$0xff] (!%p237_p3), %vm341_vm2, %v1342_v0  ;;  %347 = vst.msk [vmem:[#allocation3 + $0x8] sm:$0xff] (!%p237_p3), %vm341_vm2, %v1342_v0 }
   0xc   : > { %348 = vst.msk [vmem:[#allocation3 + $0x10] sm:$0xff] (!%p237_p3), %vm341_vm2, %v1342_v0  ;;  %349 = vst.msk [vmem:[#allocation3 + $0x18] sm:$0xff] (!%p237_p3), %vm341_vm2, %v1342_v0 }
   0xe   : > { %s1586_s15 = smov (!%p294_p4, %s1332_s15), 1 }
   0xf   : > { %s1409_s19 = smul.u32 12, %s1586_s15  ;;  %s328_s28 = scalar_lea.vmem %s1579_s3, %s1586_s15 }
  0x10   : > { %v1446_v6 = vld [vmem:[%s328_s28] ss:$0 sm:$0xff]  ;;  %s1158_s9 = sshll.u32 %s1586_s15, 2 }
  0x11   : > { %s1415_s22 = scalar_lea.vmem %s1577_s1, %s1409_s19  ;;  %s1422_s25 = scalar_lea.vmem %s1576_s0, %s1409_s19  ;;  %v1462_v20 = vld [vmem:[#allocation2] sm:$0xff] }
  0x12   : > { %v1159_v1 = vld [vmem:[%s1415_s22 + $0x4] sm:$0xf]  ;;  %v356_v3 = vld [vmem:[%s1422_s25] sm:$0xf]  ;;  %s1476_s8 = scalar_lea.vmem %s1578_s2, %s1409_s19  ;;  %s335_s12 = scalar_lea.vmem %s1580_s4, %s1158_s9 }
  0x13   : > { %v363_v2 = vsel %vm350_vm0, %v1159_v1, 0  ;;  %v1285_v14 = vld [vmem:[%s1415_s22 + $0x4] ss:$0 sps:$4 sm:$0xff]   ;;  %v1286_v15 = vld [vmem:[%s1422_s25] ss:$0 sps:$4 sm:$0xff]  }
  0x14   : > { %1204 = vmatpush3.bf16.xpose.msra.mxu0 %v363_v2  ;;  %507 = vrot.lane.b32.xlu1 %v1285_v14, %s1346_s29  ;;  %v1287_v16 = vld [vmem:[%s1415_s22 + $0x4] ss:$0 sps:$4 sm:$0xff]   ;;  %v1288_v17 = vld [vmem:[%s1422_s25] ss:$0 sps:$4 sm:$0xff]   ;;  %v1162_v24 = vld [vmem:[%s1476_s8 + $0x8] sm:$0xf] }
  0x15   : > { %1221 = vmatprep.subr.bf16.mxu0 %v1342_v0  ;;  %v1289_v18 = vld [vmem:[%s1415_s22 + $0x4] ss:$0 sps:$4 sm:$0xff]   ;;  %v1290_v19 = vld [vmem:[%s1422_s25] ss:$0 sps:$4 sm:$0xff]   ;;  %v452_v25 = vsel %vm450_vm4, %v1162_v24, 0  ;;  %v1508_v2 = vld [vmem:[#allocation2 + $0x8] sm:$0xff] }
  0x16   : > { %1210 = vmatpush3.bf16.msra.mxu1 %v452_v25  ;;  %v1291_v14 = vld [vmem:[%s1476_s8 + $0x8] ss:$0 sps:$4 sm:$0xff]  }
  0x17   : > { %1215 = vmatprep.subr.bf16.mxu1 %v1342_v0 }
  0x18   : > { %502 = vrot.lane.b32.xlu1 %v1286_v15, %s1346_s29  ;;  %v1292_v15 = vld [vmem:[%s1476_s8 + $0x8] ss:$0 sps:$4 sm:$0xff]  }
  0x1b   : > { %1206 = vmatmul.mubr.msk.bf16.vlgmr.msra.gmra.mrb[0].mxu0 %vm350_vm0, %v356_v3 }
  0x1c   : > { %1223 = vmatprep.mubr.msk.bf16.mxu0 %vm1343_vm1, %v1342_v0  ;;  %656 = vrot.lane.b32.xlu1 %v1287_v16, %s1347_s30  ;;  %v1293_v16 = vld [vmem:[%s1476_s8 + $0x8] ss:$0 sps:$4 sm:$0xff]  }
  0x20   : > { %651 = vrot.lane.b32.xlu1 %v1288_v17, %s1347_s30 }
  0x24   : > { %805 = vrot.lane.b32.xlu1 %v1289_v18, %s1348_s5 }
  0x28   : > { %800 = vrot.lane.b32.xlu1 %v1290_v19, %s1348_s5 }
  0x86   : > { %v508_v29 = vpop.permute.xlu1 %507 }
  0x87   : > { %v513_v32 = vsel %vm350_vm0, %v508_v29, 0 }
  0x8a   : > { %v503_v30 = vpop.permute.xlu1 %502 }
  0x8e   : > { %v657_v34 = vpop.permute.xlu1 %656 }
  0x8f   : > { %v662_v36 = vsel %vm350_vm0, %v657_v34, 0 }
  0x92   : > { %v652_v35 = vpop.permute.xlu1 %651 }
  0x96   : > { %v806_v37 = vpop.permute.xlu1 %805 }
  0x97   : > { %v811_v38 = vsel %vm350_vm0, %v806_v37, 0 }
  0x9a   : > { %v801_v39 = vpop.permute.xlu1 %800 }
  0xee   : > { %v399_v5 = vpop.f32.mrb[0].mxu0 }
  0xef   : > { %v405_v7 = vmul.f32 0.17677669, %v399_v5  ;;  %v1207_v8 = vpop.f32.mrb[1].mxu0 }
  0xf0   : > { %v402_v9 = vpop.f32.mrb[2].mxu0 }
  0xf1   : > { %v1208_v10 = vpop.f32.mrb[3].mxu0  ;;  %v412_v11 = vadd.f32 %v1446_v6, %v405_v7 }
  0xf2   : > { %v856_v10 = vld [vmem:[#allocation2 + $0x18] sm:$0xff] }
  0xf3   : > { %v415_v12 = vsel %vm414_vm3, %v412_v11, -inf }
  0xf4   : > { %416 = vmax.xlane.f32.xlu0 %v415_v12 }
 0x181   : > { %v417_v21 = vpop.xlane.xlu0 %416 }
 0x182   : > { %v1465_v22 = vmax.f32 %v1462_v20, %v417_v21 }
 0x184   : > { %v419_v23 = vsub.f32 %v1462_v20, %v1465_v22  ;;  %496 = vst.msk [vmem:[#allocation2] sm:$0xff] %vm341_vm2, %v1465_v22  ;;  %424 = vperm.xlu0 %1283, %v1465_v22  }
 0x203   : > { %v425_v26 = vpop.permute.xlu0 %424 }
 0x204   : > { %v427_v27 = vsub.f32 %v412_v11, %v425_v26 }
 0x206   : > { %v428_v28 = vmul.f32 1.442695, %v427_v27 }
 0x208   : > { %1294 = vpow2.f32 %v428_v28 }
 0x212   : > { %v1481_v31 = vpop.eup %1294 }
 0x213   : > { %v445_v33 = vpack.c.bf16 %v1481_v31, %v1481_v31  ;;  %v432_v17 = vsel %vm414_vm3, %v1481_v31, 0.0 }
 0x215   : > { %1212 = vmatmul.mubr.msk.bf16.vlgmr.msra.gmra.mrb[0].mxu1 %vm414_vm3, %v445_v33 }
 0x216   : > { %1216 = vmatpush3.bf16.xpose.msra.mxu1 %v513_v32  ;;  %1217 = vmatprep.mubr.msk.bf16.mxu1 %vm1343_vm1, %v1342_v0 }
 0x217   : > { %1227 = vmatprep.subr.bf16.mxu1 %v1342_v0 }
 0x21d   : > { %1218 = vmatmul.mubr.msk.bf16.vlgmr.msra.gmra.mrb[4].mxu1 %vm350_vm0, %v503_v30 }
 0x21e   : > { %1228 = vmatpush3.bf16.xpose.msra.mxu1 %v662_v36  ;;  %1229 = vmatprep.mubr.msk.bf16.mxu1 %vm1343_vm1, %v1342_v0 }
 0x21f   : > { %1239 = vmatprep.subr.bf16.mxu1 %v1342_v0 }
 0x225   : > { %1230 = vmatmul.mubr.msk.bf16.vlgmr.msra.gmra.mrb[8].mxu1 %vm350_vm0, %v652_v35 }
 0x226   : > { %1240 = vmatpush3.bf16.xpose.msra.mxu1 %v811_v38  ;;  %1241 = vmatprep.mubr.msk.bf16.mxu1 %vm1343_vm1, %v1342_v0 }
 0x22d   : > { %1242 = vmatmul.mubr.msk.bf16.vlgmr.msra.gmra.mrb[12].mxu1 %vm350_vm0, %v801_v39 }
 0x2e8   : > { %v1500_v40 = vpop.f32.mrb[0].mxu1 }
 0x2e9   : > { %v1213_v41 = vpop.f32.mrb[1].mxu1 }
 0x2ea   : > { %v491_v42 = vpop.f32.mrb[2].mxu1 }
 0x2eb   : > { %v1214_v43 = vpop.f32.mrb[3].mxu1 }
 0x2f0   : > { %v549_v44 = vpop.f32.mrb[4].mxu1 }
 0x2f1   : > { %v555_v45 = vmul.f32 0.17677669, %v549_v44  ;;  %v1219_v46 = vpop.f32.mrb[5].mxu1  ;;  %v420_v44 = vmul.f32 1.442695, %v419_v23 }
 0x2f2   : > { %v552_v47 = vpop.f32.mrb[6].mxu1 }
 0x2f3   : > { %v1220_v48 = vpop.f32.mrb[7].mxu1  ;;  %v556_v49 = vadd.f32 %v1446_v6, %v555_v45 }
 0x2f5   : > { %v559_v50 = vsel %vm414_vm3, %v556_v49, -inf }
 0x2f6   : > { %560 = vmax.xlane.f32.xlu1 %v559_v50 }
 0x2f8   : > { %v698_v51 = vpop.f32.mrb[8].mxu1 }
 0x2f9   : > { %v704_v52 = vmul.f32 0.17677669, %v698_v51  ;;  %v1231_v53 = vpop.f32.mrb[9].mxu1  ;;  %v430_v51 = vld [vmem:[#allocation3] sm:$0xff] }
 0x2fa   : > { %v701_v54 = vpop.f32.mrb[10].mxu1 }
 0x2fb   : > { %v1232_v55 = vpop.f32.mrb[11].mxu1  ;;  %v705_v56 = vadd.f32 %v1446_v6, %v704_v52 }
 0x2fc   : > { %v575_v55 = vld [vmem:[#allocation3 + $0x8] sm:$0xff] }
 0x2fd   : > { %v708_v57 = vsel %vm414_vm3, %v705_v56, -inf }
 0x2fe   : > { %709 = vmax.xlane.f32.xlu0 %v708_v57 }
 0x300   : > { %v847_v58 = vpop.f32.mrb[12].mxu1 }
 0x301   : > { %v853_v59 = vmul.f32 0.17677669, %v847_v58  ;;  %v1243_v60 = vpop.f32.mrb[13].mxu1 }
 0x302   : > { %v850_v61 = vpop.f32.mrb[14].mxu1 }
 0x303   : > { %v1244_v62 = vpop.f32.mrb[15].mxu1  ;;  %v854_v63 = vadd.f32 %v1446_v6, %v853_v59  ;;  %v1518_v6 = vld [vmem:[#allocation2 + $0x10] sm:$0xff] }
 0x304   : > { %v724_v59 = vld [vmem:[#allocation3 + $0x10] sm:$0xff] }
 0x305   : > { %v857_v1 = vsel %vm414_vm3, %v854_v63, -inf }
 0x306   : > { %858 = vmax.xlane.f32.xlu1 %v857_v1  ;;  %v873_v1 = vld [vmem:[#allocation3 + $0x18] sm:$0xff] }
 0x383   : > { %v561_v3 = vpop.xlane.xlu1 %560 }
 0x384   : > { %v1511_v4 = vmax.f32 %v1508_v2, %v561_v3 }
 0x386   : > { %v563_v5 = vsub.f32 %v1508_v2, %v1511_v4  ;;  %645 = vst.msk [vmem:[#allocation2 + $0x8] sm:$0xff] %vm341_vm2, %v1511_v4  ;;  %568 = vperm.xlu1 %1284, %v1511_v4   ;;  %v438_v2 = vld [vmem:[#allocation4] sm:$0xff] }
 0x388   : > { %v564_v46 = vmul.f32 1.442695, %v563_v5 }
 0x38b   : > { %v710_v7 = vpop.xlane.xlu0 %709 }
 0x38c   : > { %v711_v8 = vmax.f32 %v1518_v6, %v710_v7 }
 0x38e   : > { %v712_v9 = vsub.f32 %v1518_v6, %v711_v8  ;;  %794 = vst.msk [vmem:[#allocation2 + $0x10] sm:$0xff] %vm341_vm2, %v711_v8  ;;  %717 = vperm.xlu0 %1283, %v711_v8  }
 0x390   : > { %v713_v48 = vmul.f32 1.442695, %v712_v9 }
 0x393   : > { %v859_v11 = vpop.xlane.xlu1 %858 }
 0x394   : > { %v860_v12 = vmax.f32 %v856_v10, %v859_v11  ;;  %v583_v11 = vld [vmem:[#allocation4 + $0x8] sm:$0xff] }
 0x396   : > { %v861_v13 = vsub.f32 %v856_v10, %v860_v12  ;;  %943 = vst.msk [vmem:[#allocation2 + $0x18] sm:$0xff] %vm341_vm2, %v860_v12  ;;  %866 = vperm.xlu1 %1284, %v860_v12  }
 0x398   : > { %v862_v47 = vmul.f32 1.442695, %v861_v13 }
 0x39a   : > { %595 = vrot.lane.b32.xlu1 %v1291_v14, %s1346_s29 }
 0x39e   : > { %744 = vrot.lane.b32.xlu1 %v1292_v15, %s1347_s30 }
 0x3a2   : > { %893 = vrot.lane.b32.xlu1 %v1293_v16, %s1348_s5 }
 0x3c6   : > { %433 = vadd.xlane.f32.xlu1 %v432_v17 }
 0x405   : > { %v569_v18 = vpop.permute.xlu1 %568 }
 0x406   : > { %v571_v19 = vsub.f32 %v556_v49, %v569_v18 }
 0x408   : > { %v572_v21 = vmul.f32 1.442695, %v571_v19  ;;  %v732_v19 = vld [vmem:[#allocation4 + $0x10] sm:$0xff] }
 0x40a   : > { %1296 = vpow2.f32 %v572_v21 }
 0x40d   : > { %v718_v24 = vpop.permute.xlu0 %717 }
 0x40e   : > { %v720_v25 = vsub.f32 %v705_v56, %v718_v24 }
 0x410   : > { %v721_v26 = vmul.f32 1.442695, %v720_v25 }
 0x412   : > { %1298 = vpow2.f32 %v721_v26 }
 0x414   : > { %v1297_v27 = vpop.eup %1296 }
 0x415   : > { %v867_v28 = vpop.permute.xlu1 %866  ;;  %v577_v29 = vsel %vm414_vm3, %v1297_v27, 0.0  ;;  %v590_v35 = vpack.c.bf16 %v1297_v27, %v1297_v27 }
 0x416   : > { %v869_v30 = vsub.f32 %v854_v63, %v867_v28  ;;  %578 = vadd.xlane.f32.xlu0 %v577_v29  ;;  %v881_v29 = vld [vmem:[#allocation4 + $0x18] sm:$0xff] }
 0x418   : > { %v870_v32 = vmul.f32 1.442695, %v869_v30 }
 0x419   : > { %v596_v33 = vpop.permute.xlu1 %595 }
 0x41a   : > { %1300 = vpow2.f32 %v870_v32  ;;  %v601_v31 = vsel %vm450_vm4, %v596_v33, 0 }
 0x41b   : > { %1222 = vmatpush3.bf16.msra.mxu0 %v601_v31  ;;  %1302 = vpow2.f32 %v420_v44 }
 0x41c   : > { %v1299_v34 = vpop.eup %1298  ;;  %1233 = vmatprep.subr.bf16.mxu0 %v1342_v0  ;;  %1304 = vpow2.f32 %v564_v46 }
 0x41d   : > { %v726_v36 = vsel %vm414_vm3, %v1299_v34, 0.0  ;;  %v745_v37 = vpop.permute.xlu1 %744  ;;  %v739_v42 = vpack.c.bf16 %v1299_v34, %v1299_v34  ;;  %1306 = vpow2.f32 %v862_v47 }
 0x41e   : > { %727 = vadd.xlane.f32.xlu0 %v726_v36  ;;  %1224 = vmatmul.mubr.msk.bf16.vlgmr.msra.gmra.mrb[4].mxu0 %vm414_vm3, %v590_v35  ;;  %v750_v38 = vsel %vm450_vm4, %v745_v37, 0  ;;  %1308 = vpow2.f32 %v713_v48 }
 0x41f   : > { %1234 = vmatpush3.bf16.msra.mxu0 %v750_v38  ;;  %1235 = vmatprep.mubr.msk.bf16.mxu0 %vm1343_vm1, %v1342_v0 }
 0x420   : > { %1245 = vmatprep.subr.bf16.mxu0 %v1342_v0 }
 0x421   : > { %v894_v39 = vpop.permute.xlu1 %893 }
 0x422   : > { %v899_v43 = vsel %vm450_vm4, %v894_v39, 0 }
 0x424   : > { %v1301_v41 = vpop.eup %1300 }
 0x425   : > { %v875_v45 = vsel %vm414_vm3, %v1301_v41, 0.0  ;;  %v888_v49 = vpack.c.bf16 %v1301_v41, %v1301_v41  ;;  %v1303_v20 = vpop.eup %1302 }
 0x426   : > { %1236 = vmatmul.mubr.msk.bf16.vlgmr.msra.gmra.mrb[8].mxu0 %vm414_vm3, %v739_v42  ;;  %876 = vadd.xlane.f32.xlu1 %v875_v45  ;;  %v1305_v22 = vpop.eup %1304 }
 0x427   : > { %1246 = vmatpush3.bf16.msra.mxu0 %v899_v43  ;;  %1247 = vmatprep.mubr.msk.bf16.mxu0 %vm1343_vm1, %v1342_v0  ;;  %v1307_v23 = vpop.eup %1306  ;;  %v431_v0 = vmul.f32 %v1303_v20, %v430_v51  ;;  %v576_v56 = vmul.f32 %v1305_v22, %v575_v55 }
 0x428   : > { %v1309_v50 = vpop.eup %1308  ;;  %v874_v3 = vmul.f32 %v1307_v23, %v873_v1 }
 0x429   : > { %v725_v60 = vmul.f32 %v1309_v50, %v724_v59 }
 0x42e   : > { %1248 = vmatmul.mubr.msk.bf16.vlgmr.msra.gmra.mrb[12].mxu0 %vm414_vm3, %v888_v49 }
 0x434   : > { %441 = vperm.xlu0 %1283, %v1303_v20  }
 0x437   : > { %586 = vperm.xlu1 %1284, %v1305_v22  }
 0x438   : > { %884 = vperm.xlu0 %1283, %v1307_v23  }
 0x43b   : > { %735 = vperm.xlu1 %1284, %v1309_v50  }
 0x453   : > { %v434_v52 = vpop.xlane.xlu1 %433 }
 0x454   : > { %v435_v53 = vadd.f32 %v434_v52, %v431_v0 }
 0x456   : > { %437 = vst.msk [vmem:[#allocation3] sm:$0xff] %vm341_vm2, %v435_v53 }
 0x45d   : > { %v948_v54 = vld [vmem:[#allocation3] sm:$0xff] }
 0x45e   : > { %951 = vperm.xlu1 %1284, %v948_v54  }
 0x4a3   : > { %v579_v57 = vpop.xlane.xlu0 %578 }
 0x4a4   : > { %v580_v58 = vadd.f32 %v579_v57, %v576_v56 }
 0x4a6   : > { %581 = vst.msk [vmem:[#allocation3 + $0x8] sm:$0xff] %vm341_vm2, %v580_v58 }
 0x4ab   : > { %v728_v61 = vpop.xlane.xlu0 %727 }
 0x4ac   : > { %v729_v62 = vadd.f32 %v728_v61, %v725_v60 }
 0x4ad   : > { %v958_v63 = vld [vmem:[#allocation3 + $0x8] sm:$0xff] }
 0x4ae   : > { %730 = vst.msk [vmem:[#allocation3 + $0x10] sm:$0xff] %vm341_vm2, %v729_v62  ;;  %961 = vperm.xlu0 %1283, %v958_v63  }
 0x4b3   : > { %v877_v4 = vpop.xlane.xlu1 %876  ;;  %v442_v5 = vpop.permute.xlu0 %441 }
 0x4b4   : > { %v878_v6 = vadd.f32 %v877_v4, %v874_v3  ;;  %v444_v7 = vmul.f32 %v442_v5, %v438_v2 }
 0x4b5   : > { %v968_v8 = vld [vmem:[#allocation3 + $0x10] sm:$0xff] }
 0x4b6   : > { %879 = vst.msk [vmem:[#allocation3 + $0x18] sm:$0xff] %vm341_vm2, %v878_v6  ;;  %v494_v9 = vadd.f32 %v1500_v40, %v444_v7  ;;  %971 = vperm.xlu1 %1284, %v968_v8  }
 0x4b7   : > { %v587_v12 = vpop.permute.xlu1 %586  ;;  %v885_v30 = vpop.permute.xlu0 %884 }
 0x4b8   : > { %495 = vst.msk [vmem:[#allocation4] sm:$0xff] %vm350_vm0, %v494_v9  ;;  %v589_v13 = vmul.f32 %v587_v12, %v583_v11  ;;  %v887_v32 = vmul.f32 %v885_v30, %v881_v29 }
 0x4bb   : > { %v736_v21 = vpop.permute.xlu1 %735 }
 0x4bc   : > { %v738_v24 = vmul.f32 %v736_v21, %v732_v19 }
 0x4bd   : > { %v978_v10 = vld [vmem:[#allocation3 + $0x18] sm:$0xff] }
 0x4be   : > { %981 = vperm.xlu0 %1283, %v978_v10  }
 0x4bf   : > { %v947_v0 = vld [vmem:[#allocation4] sm:$0xff] }
 0x4dd   : > { %v952_v38 = vpop.permute.xlu1 %951 }
 0x4f1   : > { %v637_v14 = vpop.f32.mrb[4].mxu0 }
 0x4f2   : > { %v643_v15 = vadd.f32 %v637_v14, %v589_v13  ;;  %v1225_v16 = vpop.f32.mrb[5].mxu0 }
 0x4f3   : > { %v640_v17 = vpop.f32.mrb[6].mxu0 }
 0x4f4   : > { %644 = vst.msk [vmem:[#allocation4 + $0x8] sm:$0xff] %vm350_vm0, %v643_v15  ;;  %v1226_v18 = vpop.f32.mrb[7].mxu0 }
 0x4f9   : > { %v786_v25 = vpop.f32.mrb[8].mxu0 }
 0x4fa   : > { %v792_v40 = vadd.f32 %v786_v25, %v738_v24  ;;  %v1237_v26 = vpop.f32.mrb[9].mxu0 }
 0x4fb   : > { %v789_v27 = vpop.f32.mrb[10].mxu0  ;;  %v957_v42 = vld [vmem:[#allocation4 + $0x8] sm:$0xff] }
 0x4fc   : > { %793 = vst.msk [vmem:[#allocation4 + $0x10] sm:$0xff] %vm350_vm0, %v792_v40  ;;  %v1238_v28 = vpop.f32.mrb[11].mxu0 }
 0x501   : > { %v935_v33 = vpop.f32.mrb[12].mxu0 }
 0x502   : > { %v941_v31 = vadd.f32 %v935_v33, %v887_v32  ;;  %v1249_v34 = vpop.f32.mrb[13].mxu0 }
 0x503   : > { %v938_v35 = vpop.f32.mrb[14].mxu0  ;;  %v967_v47 = vld [vmem:[#allocation4 + $0x10] sm:$0xff] }
 0x504   : > { %942 = vst.msk [vmem:[#allocation4 + $0x18] sm:$0xff] %vm350_vm0, %v941_v31  ;;  %v1250_v36 = vpop.f32.mrb[15].mxu0 }
 0x50b   : > { %v977_v22 = vld [vmem:[#allocation4 + $0x18] sm:$0xff] }
 0x52d   : > { %v962_v37 = vpop.permute.xlu0 %961 }
 0x52e   : > { %1310 = vrcp.f32 %v962_v37 }
 0x535   : > { %v972_v39 = vpop.permute.xlu1 %971 }
 0x536   : > { %1312 = vrcp.f32 %v972_v39 }
 0x538   : > { %v1311_v41 = vpop.eup %1310 }
 0x539   : > { %v965_v43 = vmul.f32 %v1311_v41, %v957_v42 }
 0x53b   : > { %v966_v44 = vpack.c.bf16 %v965_v43, %v965_v43 }
 0x53d   : > { %v982_v45 = vpop.permute.xlu0 %981  ;;  %988 = vrot.lane.b32.xlu1 %v966_v44, %s1348_s5 }
 0x53e   : > { %1314 = vrcp.f32 %v982_v45 }
 0x53f   : > { %1316 = vrcp.f32 %v952_v38 }
 0x540   : > { %v1313_v46 = vpop.eup %1312 }
 0x541   : > { %v975_v48 = vmul.f32 %v1313_v46, %v967_v47 }
 0x543   : > { %v976_v49 = vpack.c.bf16 %v975_v48, %v975_v48 }
 0x545   : > { %991 = vrot.lane.b32.xlu0 %v976_v49, %s1347_s30 }
 0x548   : > { %v1315_v20 = vpop.eup %1314 }
 0x549   : > { %v985_v23 = vmul.f32 %v1315_v20, %v977_v22  ;;  %v1317_v51 = vpop.eup %1316 }
 0x54a   : > { %v955_v52 = vmul.f32 %v1317_v51, %v947_v0 }
 0x54b   : > { %v986_v50 = vpack.c.bf16 %v985_v23, %v985_v23 }
 0x54c   : > { %v956_v54 = vpack.c.bf16 %v955_v52, %v955_v52 }
 0x54d   : > { %994 = vrot.lane.b32.xlu1 %v986_v50, %s1346_s29 }
 0x5af   : > { %v989_v53 = vpop.permute.xlu1 %988 }
 0x5b0   : > { %v998_v56 = vsel %vm350_vm0, %v956_v54, %v989_v53 }
 0x5b7   : > { %v992_v55 = vpop.permute.xlu0 %991 }
 0x5b8   : > { %v1001_v57 = vsel %vm999_vm5, %v998_v56, %v992_v55 }
 0x5bf   : > { %v995_v58 = vpop.permute.xlu1 %994 }
 0x5c0   : > { %v1004_v59 = vsel %vm1002_vm6, %v1001_v57, %v995_v58 }
 0x5c1   : > { %1006 = vst [vmem:[%s335_s12] sm:$0xf] %v1004_v59 }
 0x5c2 PF: > { %s14_s17 = sadd.s32 1, %s1340_s17   ;;  %s1581_s15 = smov %s1336_s16 }
 0x5c3   : > { %p11_p5 = scmp.ge.s32.totalorder %s14_s17, 4   ;;  %s1582_s16 = smov %s1584_s18 }
 0x5c5   :  { %13 = sbr.rel (!%p11_p5) target bundleno = 2 (0x2), region = 92 }

// kernel: roberta_forward.15
= control target key start
LH: loop header
LB: loop body
LE: loop exit
PB: predicated region body
PF: predicated region fallthrough
CT: control target
= control target key end

     0   :  { %v410_v0 = vmov 0.0   ;;  %vm411_vm0 = vmmov 0   ;;  %v412_v3 = vmov 0   ;;  %v51_v27 = vlaneseq  ;;  %s523_s1 = inlined_call_operand.vmem [shape: bf16[128,384], index: 1, kind: input, shape index: {}]   ;;  %s524_s0 = inlined_call_operand.vmem [shape: bf16[16,128], index: 0, kind: input, shape index: {}]   ;;  %s525_s2 = inlined_call_operand.vmem [shape: f32[1,384], index: 2, kind: input, shape index: {}]   ;;  %s526_s3 = inlined_call_operand.vmem [shape: bf16[16,384], index: 3, kind: output, shape index: {}]  }
   0x1   :  { %354 = vmatprep.subr.bf16.mxu1 %v410_v0  ;;  %v377_v1 = vld [vmem:[%s523_s1 + $0x4] ss:$12 sps:$4 sm:$0xff]   ;;  %370 = vmatprep.mubr.msk.bf16.mxu1 %vm411_vm0, %v410_v0  ;;  %v379_v2 = vld [vmem:[%s523_s1 + $0x8] ss:$12 sps:$4 sm:$0xff]   ;;  %v380_v4 = vld [vmem:[%s523_s1] ss:$12 sps:$4 sm:$0xff]  }
   0x2   :  { %232 = vmatprep.mubr.bf16.mxu0 %v412_v3  ;;  %200 = vmatprep.subr.bf16.mxu0 %v377_v1  ;;  %v381_v5 = vld [vmem:[%s523_s1 + $0x1c] ss:$12 sps:$4 sm:$0xff]   ;;  %v383_v6 = vld [vmem:[%s523_s1 + $0x20] ss:$12 sps:$4 sm:$0xff]   ;;  %v384_v7 = vld [vmem:[%s523_s1 + $0x18] ss:$12 sps:$4 sm:$0xff]  }
   0x3   :  { %355 = vmatpush3.bf16.msra.mxu1 %v379_v2  ;;  %201 = vmatpush1.bf16.msra.mxu0 %v380_v4  ;;  %v385_v8 = vld [vmem:[%s523_s1 + $0x34] ss:$12 sps:$4 sm:$0xff]   ;;  %v387_v9 = vld [vmem:[%s523_s1 + $0x38] ss:$12 sps:$4 sm:$0xff]   ;;  %v388_v10 = vld [vmem:[%s523_s1 + $0x30] ss:$12 sps:$4 sm:$0xff]  }
   0x4   :  { %356 = vmatprep.subr.bf16.mxu1 %v410_v0  ;;  %202 = vmatprep.subr.bf16.mxu0 %v381_v5  ;;  %v389_v11 = vld [vmem:[%s523_s1 + $0x4c] ss:$12 sps:$4 sm:$0xff]   ;;  %v391_v12 = vld [vmem:[%s523_s1 + $0x50] ss:$12 sps:$4 sm:$0xff]   ;;  %v392_v13 = vld [vmem:[%s523_s1 + $0x48] ss:$12 sps:$4 sm:$0xff]  }
   0x5   :  { %v393_v14 = vld [vmem:[%s523_s1 + $0x64] ss:$12 sps:$4 sm:$0xff]   ;;  %v395_v15 = vld [vmem:[%s523_s1 + $0x68] ss:$12 sps:$4 sm:$0xff]   ;;  %v396_v16 = vld [vmem:[%s523_s1 + $0x60] ss:$12 sps:$4 sm:$0xff]  }
   0x6   :  { %v397_v17 = vld [vmem:[%s523_s1 + $0x7c] ss:$12 sps:$4 sm:$0xff]   ;;  %v399_v18 = vld [vmem:[%s523_s1 + $0x80] ss:$12 sps:$4 sm:$0xff]   ;;  %v400_v19 = vld [vmem:[%s523_s1 + $0x78] ss:$12 sps:$4 sm:$0xff]  }
   0x7   :  { %357 = vmatpush3.bf16.msra.mxu1 %v383_v6  ;;  %203 = vmatpush1.bf16.msra.mxu0 %v384_v7  ;;  %v401_v20 = vld [vmem:[%s523_s1 + $0x94] ss:$12 sps:$4 sm:$0xff]   ;;  %v403_v21 = vld [vmem:[%s523_s1 + $0x98] ss:$12 sps:$4 sm:$0xff]   ;;  %v404_v22 = vld [vmem:[%s523_s1 + $0x90] ss:$12 sps:$4 sm:$0xff]  }
   0x8   :  { %358 = vmatprep.subr.bf16.mxu1 %v410_v0  ;;  %204 = vmatprep.subr.bf16.mxu0 %v385_v8  ;;  %v405_v23 = vld [vmem:[%s523_s1 + $0xac] ss:$12 sps:$4 sm:$0xff]   ;;  %v407_v24 = vld [vmem:[%s523_s1 + $0xb0] ss:$12 sps:$4 sm:$0xff]   ;;  %v408_v25 = vld [vmem:[%s523_s1 + $0xa8] ss:$12 sps:$4 sm:$0xff]  }
   0x9   :  { %v409_v26 = vld [vmem:[%s524_s0] sm:$0xff]   ;;  %v52_v28 = vshrl.u32 %v51_v27, 7 }
   0xa   :  { %v49_v30 = vld [vmem:[%s525_s2] sm:$0x7] }
   0xb   :  { %359 = vmatpush3.bf16.msra.mxu1 %v387_v9  ;;  %205 = vmatpush1.bf16.msra.mxu0 %v388_v10  ;;  %v61_v29 = vsub.s32 2, %v52_v28  ;;  %v53_v31 = vsub.s32 0, %v52_v28  ;;  %v57_v32 = vsub.s32 1, %v52_v28 }
   0xc   :  { %360 = vmatprep.subr.bf16.mxu1 %v410_v0  ;;  %206 = vmatprep.subr.bf16.mxu0 %v389_v11 }
   0xd   :  { %v62_v33 = vrot.slane %v49_v30, %v61_v29  ;;  %v54_v34 = vrot.slane %v49_v30, %v53_v31  ;;  %v58_v35 = vrot.slane %v49_v30, %v57_v32 }
   0xf   :  { %361 = vmatpush3.bf16.msra.mxu1 %v391_v12  ;;  %207 = vmatpush1.bf16.msra.mxu0 %v392_v13 }
  0x10   :  { %362 = vmatprep.subr.bf16.mxu1 %v410_v0  ;;  %208 = vmatprep.subr.bf16.mxu0 %v393_v14 }
  0x13   :  { %363 = vmatpush3.bf16.msra.mxu1 %v395_v15  ;;  %209 = vmatpush1.bf16.msra.mxu0 %v396_v16 }
  0x14   :  { %364 = vmatprep.subr.bf16.mxu1 %v410_v0  ;;  %210 = vmatprep.subr.bf16.mxu0 %v397_v17 }
  0x17   :  { %365 = vmatpush3.bf16.msra.mxu1 %v399_v18  ;;  %211 = vmatpush1.bf16.msra.mxu0 %v400_v19 }
  0x18   :  { %366 = vmatprep.subr.bf16.mxu1 %v410_v0  ;;  %212 = vmatprep.subr.bf16.mxu0 %v401_v20 }
  0x1b   :  { %367 = vmatpush3.bf16.msra.mxu1 %v403_v21  ;;  %213 = vmatpush1.bf16.msra.mxu0 %v404_v22 }
  0x1c   :  { %368 = vmatprep.subr.bf16.mxu1 %v410_v0  ;;  %214 = vmatprep.subr.bf16.mxu0 %v405_v23 }
  0x1f   :  { %369 = vmatpush3.bf16.msra.mxu1 %v407_v24  ;;  %215 = vmatpush1.bf16.msra.mxu0 %v408_v25 }
  0x22   :  { %371 = vmatmul.mubr.bf16.vlgmr.msra.gmra.mrb[0].mxu1 %v409_v26  ;;  %233 = vmatmul.mubr.bf16.vlgmr.msra.gmra.mrb[0].mxu0 %v409_v26 }
  0xf5   :  { %v277_v36 = vpop.f32.mrb[0].mxu1  ;;  %v234_v38 = vpop.f32.mrb[0].mxu0 }
  0xf6   :  { %v278_v37 = vadd.f32 %v277_v36, %v62_v33  ;;  %v372_v39 = vpop.f32.mrb[1].mxu1  ;;  %v235_v40 = vadd.f32 %v234_v38, %v54_v34  ;;  %v236_v41 = vpop.f32.mrb[1].mxu0 }
  0xf7   :  { %v280_v42 = vpop.f32.mrb[2].mxu1  ;;  %v237_v44 = vadd.f32 %v236_v41, %v58_v35  ;;  %v238_v46 = vpop.f32.mrb[2].mxu0 }
  0xf8   :  { %v342_v43 = vpack.c.bf16 %v278_v37, %v278_v37  ;;  %v281_v45 = vadd.f32 %v280_v42, %v62_v33  ;;  %v373_v47 = vpop.f32.mrb[3].mxu1  ;;  %v239_v48 = vadd.f32 %v238_v46, %v54_v34  ;;  %v240_v49 = vpop.f32.mrb[3].mxu0 }
  0xf9   :  { %v341_v50 = vpack.c.bf16 %v237_v44, %v235_v40  ;;  %v241_v52 = vadd.f32 %v240_v49, %v58_v35 }
  0xfa   :  { %305 = vst [vmem:[%s526_s3 + $0x8] sm:$0xf] %v342_v43  ;;  %v344_v51 = vpack.c.bf16 %v281_v45, %v281_v45 }
  0xfb   :  { %304 = vst [vmem:[%s526_s3] sm:$0xff] %v341_v50  ;;  %v343_v53 = vpack.c.bf16 %v241_v52, %v239_v48 }
  0xfc   :  { %307 = vst [vmem:[%s526_s3 + $0x14] sm:$0xf] %v344_v51 }
  0xfd   :  { %306 = vst [vmem:[%s526_s3 + $0xc] sm:$0xff] %v343_v53 }

// kernel: roberta_forward.14
= control target key start
LH: loop header
LB: loop body
LE: loop exit
PB: predicated region body
PF: predicated region fallthrough
CT: control target
= control target key end

     0   :  { %s456_s1 = inlined_call_operand.vmem [shape: bf16[256,128], index: 1, kind: input, shape index: {}]   ;;  %s457_s0 = inlined_call_operand.vmem [shape: bf16[16,256], index: 0, kind: input, shape index: {}]   ;;  %s458_s3 = inlined_call_operand.vmem [shape: bf16[16,128], index: 3, kind: input, shape index: {}]   ;;  %s459_s2 = inlined_call_operand.vmem [shape: f32[1,128], index: 2, kind: input, shape index: {}]   ;;  %s460_s4 = inlined_call_operand.vmem [shape: f32[1,128], index: 4, kind: input, shape index: {}]   ;;  %s461_s5 = inlined_call_operand.vmem [shape: f32[1,128], index: 5, kind: input, shape index: {}]   ;;  %s462_s6 = inlined_call_operand.vmem [shape: bf16[16,128], index: 6, kind: output, shape index: {}]  }
   0x1   :  { %v329_v0 = vld [vmem:[%s456_s1 + $0x40] sm:$0xff]   ;;  %v331_v2 = vld [vmem:[%s456_s1 + $0x48] sm:$0xff]   ;;  %v333_v4 = vld [vmem:[%s456_s1 + $0x50] sm:$0xff]  }
   0x2   :  { %v330_v1 = vld [vmem:[%s456_s1] sm:$0xff]   ;;  %307 = vmatprep.subr.bf16.mxu0 %v329_v0  ;;  %v332_v3 = vld [vmem:[%s456_s1 + $0x8] sm:$0xff]   ;;  %v334_v5 = vld [vmem:[%s456_s1 + $0x10] sm:$0xff]  }
   0x3   :  { %308 = vmatpush3.bf16.msra.mxu0 %v330_v1  ;;  %v335_v6 = vld [vmem:[%s456_s1 + $0x58] sm:$0xff]   ;;  %v337_v8 = vld [vmem:[%s456_s1 + $0x60] sm:$0xff]   ;;  %v339_v10 = vld [vmem:[%s456_s1 + $0x68] sm:$0xff]  }
   0x4   :  { %309 = vmatprep.subr.bf16.mxu0 %v331_v2  ;;  %v336_v7 = vld [vmem:[%s456_s1 + $0x18] sm:$0xff]   ;;  %v338_v9 = vld [vmem:[%s456_s1 + $0x20] sm:$0xff]   ;;  %v340_v12 = vld [vmem:[%s456_s1 + $0x28] sm:$0xff]  }
   0x5   :  { %v347_v11 = vld [vmem:[%s457_s0 + $0x4] ss:$8 sps:$4 sm:$0xff]   ;;  %v341_v13 = vld [vmem:[%s456_s1 + $0x70] sm:$0xff]   ;;  %v343_v15 = vld [vmem:[%s456_s1 + $0x78] sm:$0xff]  }
   0x6   :  { %203 = vmatprep.mubr.bf16.mxu0 %v347_v11  ;;  %v342_v14 = vld [vmem:[%s456_s1 + $0x30] sm:$0xff]   ;;  %v344_v16 = vld [vmem:[%s456_s1 + $0x38] sm:$0xff]   ;;  %v345_v17 = vld [vmem:[%s457_s0] ss:$8 sps:$4 sm:$0xff]  }
   0x7   :  { %310 = vmatpush3.bf16.msra.mxu0 %v332_v3  ;;  %v299_v18 = vld [vmem:[%s458_s3] sm:$0xff]  }
   0x8   :  { %311 = vmatprep.subr.bf16.mxu0 %v333_v4  ;;  %v273_v20 = vld [vmem:[%s459_s2] ss:$0 sm:$0xff]  ;;  %v300_v24 = vunpack.c.l.bf16 %v299_v18  ;;  %v301_v30 = vunpack.c.h.bf16 %v299_v18 }
   0x9   :  { %v292_v48 = vld [vmem:[%s460_s4] ss:$0 sm:$0xff] }
   0xa   :  { %v293_v52 = vld [vmem:[%s461_s5] ss:$0 sm:$0xff] }
   0xb   :  { %312 = vmatpush3.bf16.msra.mxu0 %v334_v5 }
   0xc   :  { %313 = vmatprep.subr.bf16.mxu0 %v335_v6 }
   0xf   :  { %314 = vmatpush3.bf16.msra.mxu0 %v336_v7 }
  0x10   :  { %315 = vmatprep.subr.bf16.mxu0 %v337_v8 }
  0x13   :  { %316 = vmatpush3.bf16.msra.mxu0 %v338_v9 }
  0x14   :  { %317 = vmatprep.subr.bf16.mxu0 %v339_v10 }
  0x17   :  { %318 = vmatpush3.bf16.msra.mxu0 %v340_v12 }
  0x18   :  { %319 = vmatprep.subr.bf16.mxu0 %v341_v13 }
  0x1b   :  { %320 = vmatpush3.bf16.msra.mxu0 %v342_v14 }
  0x1c   :  { %321 = vmatprep.subr.bf16.mxu0 %v343_v15 }
  0x1f   :  { %322 = vmatpush3.bf16.msra.mxu0 %v344_v16 }
  0x22   :  { %204 = vmatmul.mubr.bf16.vlgmr.msra.gmra.mrb[0].mxu0 %v345_v17 }
  0xf5   :  { %v323_v19 = vpop.f32.mrb[0].mxu0 }
  0xf6   :  { %v324_v21 = vpop.f32.mrb[1].mxu0 }
  0xf7   :  { %v325_v22 = vadd.f32 %v324_v21, %v323_v19  ;;  %v326_v23 = vpop.f32.mrb[2].mxu0 }
  0xf8   :  { %v327_v25 = vpop.f32.mrb[3].mxu0 }
  0xf9   :  { %v206_v26 = vadd.f32 %v325_v22, %v273_v20  ;;  %v328_v27 = vadd.f32 %v327_v25, %v326_v23 }
  0xfb   :  { %v209_v28 = vadd.f32 %v328_v27, %v273_v20  ;;  %v218_v29 = vadd.f32 %v300_v24, %v206_v26 }
  0xfd   :  { %220 = vadd.xlane.f32.xlu0 %v218_v29  ;;  %v219_v31 = vadd.f32 %v301_v30, %v209_v28 }
 0x101   :  { %222 = vadd.xlane.f32.xlu0 %v219_v31 }
 0x18a   :  { %v221_v32 = vpop.xlane.xlu0 %220 }
 0x18b   :  { %v225_v33 = vmul.f32 0.0078125, %v221_v32 }
 0x18d   :  { %v227_v34 = vsub.f32 %v218_v29, %v225_v33 }
 0x18e   :  { %v223_v35 = vpop.xlane.xlu0 %222 }
 0x18f   :  { %v226_v36 = vmul.f32 0.0078125, %v223_v35  ;;  %v229_v37 = vmul.f32 %v227_v34, %v227_v34 }
 0x191   :  { %v228_v38 = vsub.f32 %v219_v31, %v226_v36  ;;  %231 = vadd.xlane.f32.xlu1 %v229_v37 }
 0x193   :  { %v230_v39 = vmul.f32 %v228_v38, %v228_v38 }
 0x195   :  { %233 = vadd.xlane.f32.xlu1 %v230_v39 }
 0x21e   :  { %v232_v40 = vpop.xlane.xlu1 %231 }
 0x21f   :  { %v235_v41 = vmul.f32 0.0078125, %v232_v40 }
 0x221   :  { %v237_v42 = vadd.f32 1e-12, %v235_v41 }
 0x222   :  { %v234_v43 = vpop.xlane.xlu1 %233 }
 0x223   :  { %348 = vrsqrt.f32 %v237_v42  ;;  %v236_v44 = vmul.f32 0.0078125, %v234_v43 }
 0x225   :  { %v238_v45 = vadd.f32 1e-12, %v236_v44 }
 0x227   :  { %350 = vrsqrt.f32 %v238_v45 }
 0x22d   :  { %v349_v46 = vpop.eup %348 }
 0x22e   :  { %v241_v47 = vmul.f32 %v349_v46, %v227_v34 }
 0x230   :  { %v249_v50 = vmul.f32 %v292_v48, %v241_v47 }
 0x231   :  { %v351_v49 = vpop.eup %350 }
 0x232   :  { %v242_v51 = vmul.f32 %v351_v49, %v228_v38  ;;  %v257_v54 = vadd.f32 %v293_v52, %v249_v50 }
 0x234   :  { %v250_v53 = vmul.f32 %v292_v48, %v242_v51 }
 0x236   :  { %v258_v55 = vadd.f32 %v293_v52, %v250_v53 }
 0x238   :  { %v305_v56 = vpack.c.bf16 %v258_v55, %v257_v54 }
 0x23a   :  { %306 = vst [vmem:[%s462_s6] sm:$0xff] %v305_v56  }

</bundles_post_ra>
